<compile_context>
chip_gen: v6e
topology: v6e:2x2x1
jax: 0.10.0
libtpu: 0.0.40
codegen_flags: <defaults>
</compile_context>

<pallas_src>
import functools

import jax
import jax.numpy as jnp
import numpy as np
from jax.experimental import pallas as pl
from jax.experimental.pallas import tpu as pltpu

_LANE = 128
_SUBLANE = 8


# --------------------------- fused LSTM + FC kernel ---------------------------
def _fused_lstm_fc_kernel(x_ref, *args, num_layers):
    """args = (W_ih_0, W_hh_0, b_0, ..., fc_w, fc_b, out_ref, pre_scr, seq_scr).

    x_ref:   (T, Bt, I)      time-major input, batch tile padded to sublane width
    W_ih_l:  (I_l, 4H)       pre-transposed, gate order i,f,g,o, g-cols pre-scaled x2
    W_hh_l:  (H, 4H)         pre-transposed, g-cols pre-scaled x2
    b_l:     (1, 4H)         b_ih + b_hh, g-cols pre-scaled x2
    fc_w:    (H, O_pad)      zero-padded to a full 128-lane width
    fc_b:    (1, O_pad)
    out_ref: (Bt, O_pad)
    pre_scr: (T, Bt, 4H)     bulk input-projection (+bias) for the current layer
    seq_scr: (T, Bt, H)      inter-layer hidden sequence (not written by last layer)
    """
    layer_refs = args[: 3 * num_layers]
    fc_w_ref, fc_b_ref, out_ref, pre_ref, seq_ref = args[3 * num_layers:]

    T, Bt, I = x_ref.shape
    H = seq_ref.shape[2]

    # Lane mask selecting the g-gate columns (hoisted out of all loops).
    lane = jax.lax.broadcasted_iota(jnp.int32, (Bt, 4 * H), 1)
    is_g = (lane >= 2 * H) & (lane < 3 * H)

    # Full unroll for short sequences; partial unroll for long ones (vreg pressure).
    unroll = True if T <= 32 else 8

    h_last = jnp.zeros((Bt, H), jnp.float32)
    for layer in range(num_layers):            # static Python loop (num_layers small)
        w_ih = layer_refs[3 * layer][...]      # (I_l, 4H)  loaded once per layer
        w_hh = layer_refs[3 * layer + 1][...]  # (H, 4H)
        b = layer_refs[3 * layer + 2][...]     # (1, 4H)

        # ---- Bulk input projection over the whole sequence: ONE big MXU matmul,
        # ---- bias added once (not per unrolled step).
        if layer == 0:
            x_in = x_ref[...].reshape(T * Bt, I)
        else:
            x_in = seq_ref[...].reshape(T * Bt, H)
        pre = jnp.dot(x_in, w_ih, preferred_element_type=jnp.float32) + b
        pre_ref[...] = pre.reshape(T, Bt, 4 * H)

        last_layer = layer == num_layers - 1

        def step(t, carry, _w_hh=w_hh, _last=last_layer):
            h, c = carry
            # Only the recurrent (Bt,H)x(H,4H) dot remains on the serial path.
            gates = pre_ref[t] + jnp.dot(h, _w_hh, preferred_element_type=jnp.float32)
            # Single EUP pass: sigmoid over all 4H cols; tanh(x) = 2*sigmoid(2x) - 1
            # (g-gate pre-activations were pre-scaled by 2 in prepare_params).
            s = jax.nn.sigmoid(gates)
            act = jnp.where(is_g, 2.0 * s - 1.0, s)
            i_g = act[:, 0 * H:1 * H]
            f_g = act[:, 1 * H:2 * H]
            g_g = act[:, 2 * H:3 * H]
            o_g = act[:, 3 * H:4 * H]
            c_new = f_g * c + i_g * g_g
            h_new = o_g * jnp.tanh(c_new)
            if not _last:                       # last layer only needs h_last
                seq_ref[t] = h_new
            return (h_new, c_new)

        h0 = jnp.zeros((Bt, H), jnp.float32)
        c0 = jnp.zeros((Bt, H), jnp.float32)
        h_last, _ = jax.lax.fori_loop(0, T, step, (h0, c0), unroll=unroll)

    # FC head on the last layer's final hidden state. Dropout = identity (eval).
    out_ref[...] = (
        jnp.dot(h_last, fc_w_ref[...], preferred_element_type=jnp.float32)
        + fc_b_ref[...]
    )


# ------------------------- one-time parameter preparation ----------------------
def prepare_params(lstm_params, fc_w, fc_b):
    """Transpose LSTM weights, combine biases, pre-scale g-gate cols by 2, pad FC."""
    layers = []
    for (w_ih, w_hh, b_ih, b_hh) in lstm_params:
        H = w_hh.shape[1]
        # Scale the g-gate (columns 2H:3H, PyTorch order i,f,g,o) by 2 so the
        # kernel can use tanh(x) = 2*sigmoid(2x) - 1 with a single sigmoid pass.
        scale = jnp.ones((1, 4 * H), jnp.float32).at[:, 2 * H:3 * H].set(2.0)
        w_ih_t = w_ih.T.astype(jnp.float32) * scale            # (I_l, 4H)
        w_hh_t = w_hh.T.astype(jnp.float32) * scale            # (H, 4H)
        b = (b_ih + b_hh).reshape(1, -1).astype(jnp.float32) * scale  # (1, 4H)
        layers.append((w_ih_t, w_hh_t, b))
    O, H = fc_w.shape
    O_pad = ((O + _LANE - 1) // _LANE) * _LANE
    fc_w_t = jnp.zeros((H, O_pad), jnp.float32).at[:, :O].set(fc_w.T)
    fc_b_p = jnp.zeros((1, O_pad), jnp.float32).at[:, :O].set(fc_b)
    return layers, fc_w_t, fc_b_p


def _const_index_map(ndim):
    return lambda bi: (0,) * ndim


# ----------------------------------- forward -----------------------------------
@functools.partial(jax.jit, static_argnames=("output_size",))
def lstm_classifier_forward(x, layer_weights, fc_w_t, fc_b_p, *, output_size):
    """x: (B, T, input_size) batch_first (like the PyTorch module). -> (B, output_size)."""
    B, T, I = x.shape
    L = len(layer_weights)
    H = layer_weights[0][1].shape[0]          # W_hh: (H, 4H)
    O_pad = fc_w_t.shape[1]

    Bt = _SUBLANE                              # batch tile = one f32 sublane group
    Bp = ((B + Bt - 1) // Bt) * Bt
    n_tiles = Bp // Bt

    x_tm = jnp.transpose(x, (1, 0, 2)).astype(jnp.float32)   # (T, B, I) time-major
    x_tm = jnp.pad(x_tm, ((0, 0), (0, Bp - B), (0, 0)))      # pad batch to tile width

    flat_w = []
    for (w_ih, w_hh, b) in layer_weights:
        flat_w += [w_ih, w_hh, b]
    weight_args = flat_w + [fc_w_t, fc_b_p]

    # VMEM headroom check (v7x: 64 MiB physical, 32 MiB default scoped limit).
    resident_bytes = (
        T * Bt * I * 4                       # x tile
        + sum(int(np.prod(w.shape)) * 4 for w in weight_args)
        + T * Bt * 4 * H * 4                 # pre scratch
        + T * Bt * H * 4                     # seq scratch
        + Bt * O_pad * 4                     # out tile
    )
    assert resident_bytes * 2 < 16 * 1024 * 1024, "working set too large for VMEM"

    in_specs = [pl.BlockSpec((T, Bt, I), lambda bi: (0, bi, 0))]
    in_specs += [pl.BlockSpec(w.shape, _const_index_map(w.ndim)) for w in weight_args]

    kernel = functools.partial(_fused_lstm_fc_kernel, num_layers=L)
    out = pl.pallas_call(
        kernel,
        out_shape=jax.ShapeDtypeStruct((Bp, O_pad), jnp.float32),
        grid=(n_tiles,),
        in_specs=in_specs,
        out_specs=pl.BlockSpec((Bt, O_pad), lambda bi: (bi, 0)),
        scratch_shapes=[
            pltpu.VMEM((T, Bt, 4 * H), jnp.float32),   # bulk input-projection
            pltpu.VMEM((T, Bt, H), jnp.float32),       # inter-layer hidden sequence
        ],
        compiler_params=pltpu.CompilerParams(
            dimension_semantics=("parallel",),         # batch tiles -> 2 TCs on v7x
        ),
    )(x_tm, *weight_args)
    # TODO(synk): training-mode stochastic dropout not implemented (eval/inference semantics).
    return out[:B, :output_size]


# ------------------------------ pure-JAX reference ------------------------------
def lstm_classifier_ref(x, lstm_params, fc_w, fc_b):
    h_seq = jnp.transpose(x, (1, 0, 2))
    for (w_ih, w_hh, b_ih, b_hh) in lstm_params:
        B = h_seq.shape[1]
        H = w_hh.shape[1]

        def step(carry, x_t):
            h, c = carry
            gates = x_t @ w_ih.T + h @ w_hh.T + b_ih + b_hh
            i, f, g, o = jnp.split(gates, 4, axis=-1)
            i, f, g, o = jax.nn.sigmoid(i), jax.nn.sigmoid(f), jnp.tanh(g), jax.nn.sigmoid(o)
            c = f * c + i * g
            h = o * jnp.tanh(c)
            return (h, c), h

        (_, _), outs = jax.lax.scan(
            step, (jnp.zeros((B, H), jnp.float32), jnp.zeros((B, H), jnp.float32)), h_seq
        )
        h_seq = outs
    return h_seq[-1] @ fc_w.T + fc_b


# ------------------------------------- main -------------------------------------
if __name__ == "__main__":
    # Module hyper-parameters (small, consistent with the PyTorch __init__).
    input_size = 8
    hidden_size = 32
    num_layers = 2
    output_size = 4

    # Example input: batch=2, seq=8, features=input_size (batch_first).
    B, T = 2, 8
    key = jax.random.PRNGKey(0)
    key, kx = jax.random.split(key)
    x = jax.random.normal(kx, (B, T, input_size), dtype=jnp.float32)

    # Deterministic parameter init, PyTorch-style uniform(-1/sqrt(H), 1/sqrt(H)).
    bound = 1.0 / np.sqrt(hidden_size)
    lstm_params = []
    for layer in range(num_layers):
        in_feat = input_size if layer == 0 else hidden_size
        key, k1, k2, k3, k4 = jax.random.split(key, 5)
        w_ih = jax.random.uniform(k1, (4 * hidden_size, in_feat), jnp.float32, -bound, bound)
        w_hh = jax.random.uniform(k2, (4 * hidden_size, hidden_size), jnp.float32, -bound, bound)
        b_ih = jax.random.uniform(k3, (4 * hidden_size,), jnp.float32, -bound, bound)
        b_hh = jax.random.uniform(k4, (4 * hidden_size,), jnp.float32, -bound, bound)
        lstm_params.append((w_ih, w_hh, b_ih, b_hh))

    key, kw, kb = jax.random.split(key, 3)
    fc_w = jax.random.uniform(kw, (output_size, hidden_size), jnp.float32, -bound, bound)
    fc_b = jax.random.uniform(kb, (output_size,), jnp.float32, -bound, bound)

    # One-time parameter prep (hoisted out of the forward pass).
    layer_weights, fc_w_t, fc_b_p = prepare_params(lstm_params, fc_w, fc_b)

    out = lstm_classifier_forward(x, layer_weights, fc_w_t, fc_b_p, output_size=output_size)
    out = jax.block_until_ready(out)

    ref = jax.block_until_ready(lstm_classifier_ref(x, lstm_params, fc_w, fc_b))
    np.testing.assert_allclose(np.asarray(out), np.asarray(ref), rtol=1e-5, atol=1e-5)

    print("KERNEL_OK")
</pallas_src>

<mosaic_0001>
module attributes {stable_mosaic.version = 11 : i64} {
  func.func @_fused_lstm_fc_kernel(%arg0: i32, %arg1: memref<8x8x8xf32, #tpu.memory_space<vmem>>, %arg2: memref<8x128xf32, #tpu.memory_space<vmem>>, %arg3: memref<32x128xf32, #tpu.memory_space<vmem>>, %arg4: memref<1x128xf32, #tpu.memory_space<vmem>>, %arg5: memref<32x128xf32, #tpu.memory_space<vmem>>, %arg6: memref<32x128xf32, #tpu.memory_space<vmem>>, %arg7: memref<1x128xf32, #tpu.memory_space<vmem>>, %arg8: memref<32x128xf32, #tpu.memory_space<vmem>>, %arg9: memref<1x128xf32, #tpu.memory_space<vmem>>, %arg10: memref<8x128xf32, #tpu.memory_space<vmem>>, %arg11: memref<8x8x128xf32, #tpu.memory_space<vmem>>, %arg12: memref<8x8x32xf32, #tpu.memory_space<vmem>>) attributes {dimension_semantics = [#tpu.dimension_semantics<parallel>], iteration_bounds = array<i64: 1>, scalar_prefetch = 0 : i64, scratch_operands = 2 : i64, tpu.core_type = #tpu.core_type<tc>, window_params = [{transform_indices = @transform_0, window_bounds = array<i64: 8, 8, 8>}, {pipeline_mode = #tpu.pipeline_mode<synchronous>, transform_indices = @transform_1, window_bounds = array<i64: 8, 128>}, {pipeline_mode = #tpu.pipeline_mode<synchronous>, transform_indices = @transform_2, window_bounds = array<i64: 32, 128>}, {pipeline_mode = #tpu.pipeline_mode<synchronous>, transform_indices = @transform_3, window_bounds = array<i64: 1, 128>}, {pipeline_mode = #tpu.pipeline_mode<synchronous>, transform_indices = @transform_4, window_bounds = array<i64: 32, 128>}, {pipeline_mode = #tpu.pipeline_mode<synchronous>, transform_indices = @transform_5, window_bounds = array<i64: 32, 128>}, {pipeline_mode = #tpu.pipeline_mode<synchronous>, transform_indices = @transform_6, window_bounds = array<i64: 1, 128>}, {pipeline_mode = #tpu.pipeline_mode<synchronous>, transform_indices = @transform_7, window_bounds = array<i64: 32, 128>}, {pipeline_mode = #tpu.pipeline_mode<synchronous>, transform_indices = @transform_8, window_bounds = array<i64: 1, 128>}, {transform_indices = @transform_9, window_bounds = array<i64: 8, 128>}]} {
    %0 = tpu.iota {dimensions = array<i32: 1>} : vector<8x128xi32>
    %c64_i32 = arith.constant 64 : i32
    %1 = vector.broadcast %c64_i32 : i32 to vector<8x128xi32>
    %2 = arith.cmpi sge, %0, %1 : vector<8x128xi32>
    %c96_i32 = arith.constant 96 : i32
    %3 = vector.broadcast %c96_i32 : i32 to vector<8x128xi32>
    %4 = arith.cmpi slt, %0, %3 : vector<8x128xi32>
    %5 = arith.andi %2, %4 : vector<8x128xi1>
    %c0 = arith.constant 0 : index
    %c0_0 = arith.constant 0 : index
    %6 = vector.load %arg2[%c0, %c0_0] : memref<8x128xf32, #tpu.memory_space<vmem>>, vector<8x128xf32>
    %c0_1 = arith.constant 0 : index
    %c0_2 = arith.constant 0 : index
    %7 = vector.load %arg3[%c0_1, %c0_2] : memref<32x128xf32, #tpu.memory_space<vmem>>, vector<32x128xf32>
    %c0_3 = arith.constant 0 : index
    %c0_4 = arith.constant 0 : index
    %8 = vector.load %arg4[%c0_3, %c0_4] : memref<1x128xf32, #tpu.memory_space<vmem>>, vector<1x128xf32>
    %c0_5 = arith.constant 0 : index
    %c0_6 = arith.constant 0 : index
    %c0_7 = arith.constant 0 : index
    %9 = vector.load %arg1[%c0_5, %c0_6, %c0_7] : memref<8x8x8xf32, #tpu.memory_space<vmem>>, vector<8x8x8xf32>
    %10 = vector.shape_cast %9 : vector<8x8x8xf32> to vector<64x8xf32>
    %cst = arith.constant dense<0.000000e+00> : vector<64x128xf32>
    %11 = tpu.matmul %10, %6, %cst {dimension_numbers = #tpu.dot_dimension_numbers<[1], [0], [0], [1], [0, 0, 1, 1], [], []>} : vector<64x8xf32>, vector<8x128xf32>, vector<64x128xf32> -> vector<64x128xf32>
    %12 = vector.broadcast %8 : vector<1x128xf32> to vector<64x128xf32>
    %13 = arith.addf %11, %12 : vector<64x128xf32>
    %14 = vector.shape_cast %13 : vector<64x128xf32> to vector<8x8x128xf32>
    %c0_8 = arith.constant 0 : index
    %c0_9 = arith.constant 0 : index
    %c0_10 = arith.constant 0 : index
    %15 = vector.load %arg11[%c0_8, %c0_9, %c0_10] : memref<8x8x128xf32, #tpu.memory_space<vmem>>, vector<8x8x128xf32>
    tpu.vector_store %arg11[%c0_8, %c0_9, %c0_10], %14 {strides = array<i32>} : memref<8x8x128xf32, #tpu.memory_space<vmem>>, vector<8x8x128xf32>,
    %cst_11 = arith.constant 0.000000e+00 : f32
    %16 = vector.broadcast %cst_11 : f32 to vector<8x32xf32>
    %cst_12 = arith.constant 0.000000e+00 : f32
    %17 = vector.broadcast %cst_12 : f32 to vector<8x32xf32>
    %c0_i32 = arith.constant 0 : i32
    %18 = arith.index_cast %c0_i32 : i32 to index
    %c0_13 = arith.constant 0 : index
    %c0_14 = arith.constant 0 : index
    %19 = vector.load %arg11[%18, %c0_13, %c0_14] : memref<8x8x128xf32, #tpu.memory_space<vmem>>, vector<1x8x128xf32>
    %20 = vector.shape_cast %19 : vector<1x8x128xf32> to vector<8x128xf32>
    %cst_15 = arith.constant dense<0.000000e+00> : vector<8x128xf32>
    %21 = tpu.matmul %16, %7, %cst_15 {dimension_numbers = #tpu.dot_dimension_numbers<[1], [0], [0], [1], [0, 0, 1, 1], [], []>} : vector<8x32xf32>, vector<32x128xf32>, vector<8x128xf32> -> vector<8x128xf32>
    %22 = arith.addf %20, %21 : vector<8x128xf32>
    %23 = arith.negf %22 : vector<8x128xf32>
    %24 = math.exp %23 : vector<8x128xf32>
    %cst_16 = arith.constant 1.000000e+00 : f32
    %25 = vector.broadcast %cst_16 : f32 to vector<8x128xf32>
    %26 = arith.addf %25, %24 : vector<8x128xf32>
    %27 = arith.divf %25, %26 : vector<8x128xf32>
    %cst_17 = arith.constant 2.000000e+00 : f32
    %28 = vector.broadcast %cst_17 : f32 to vector<8x128xf32>
    %29 = arith.mulf %28, %27 : vector<8x128xf32>
    %cst_18 = arith.constant 1.000000e+00 : f32
    %30 = vector.broadcast %cst_18 : f32 to vector<8x128xf32>
    %31 = arith.subf %29, %30 : vector<8x128xf32>
    %32 = arith.select %5, %31, %27 : vector<8x128xi1>, vector<8x128xf32>
    %33 = vector.extract_strided_slice %32 {offsets = [0, 0], sizes = [8, 32], strides = [1, 1]} : vector<8x128xf32> to vector<8x32xf32>
    %34 = vector.extract_strided_slice %32 {offsets = [0, 32], sizes = [8, 32], strides = [1, 1]} : vector<8x128xf32> to vector<8x32xf32>
    %35 = vector.extract_strided_slice %32 {offsets = [0, 64], sizes = [8, 32], strides = [1, 1]} : vector<8x128xf32> to vector<8x32xf32>
    %36 = vector.extract_strided_slice %32 {offsets = [0, 96], sizes = [8, 32], strides = [1, 1]} : vector<8x128xf32> to vector<8x32xf32>
    %37 = arith.mulf %34, %17 : vector<8x32xf32>
    %38 = arith.mulf %33, %35 : vector<8x32xf32>
    %39 = arith.addf %37, %38 : vector<8x32xf32>
    %40 = math.tanh %39 : vector<8x32xf32>
    %41 = arith.mulf %36, %40 : vector<8x32xf32>
    %42 = arith.index_cast %c0_i32 : i32 to index
    %c0_19 = arith.constant 0 : index
    %c0_20 = arith.constant 0 : index
    %43 = vector.load %arg12[%42, %c0_19, %c0_20] : memref<8x8x32xf32, #tpu.memory_space<vmem>>, vector<1x8x32xf32>
    %44 = vector.shape_cast %43 : vector<1x8x32xf32> to vector<8x32xf32>
    %45 = vector.shape_cast %41 : vector<8x32xf32> to vector<1x8x32xf32>
    tpu.vector_store %arg12[%42, %c0_19, %c0_20], %45 {strides = array<i32>} : memref<8x8x32xf32, #tpu.memory_space<vmem>>, vector<1x8x32xf32>,
    %c1_i32 = arith.constant 1 : i32
    %46 = arith.index_cast %c1_i32 : i32 to index
    %c0_21 = arith.constant 0 : index
    %c0_22 = arith.constant 0 : index
    %47 = vector.load %arg11[%46, %c0_21, %c0_22] : memref<8x8x128xf32, #tpu.memory_space<vmem>>, vector<1x8x128xf32>
    %48 = vector.shape_cast %47 : vector<1x8x128xf32> to vector<8x128xf32>
    %cst_23 = arith.constant dense<0.000000e+00> : vector<8x128xf32>
    %49 = tpu.matmul %41, %7, %cst_23 {dimension_numbers = #tpu.dot_dimension_numbers<[1], [0], [0], [1], [0, 0, 1, 1], [], []>} : vector<8x32xf32>, vector<32x128xf32>, vector<8x128xf32> -> vector<8x128xf32>
    %50 = arith.addf %48, %49 : vector<8x128xf32>
    %51 = arith.negf %50 : vector<8x128xf32>
    %52 = math.exp %51 : vector<8x128xf32>
    %cst_24 = arith.constant 1.000000e+00 : f32
    %53 = vector.broadcast %cst_24 : f32 to vector<8x128xf32>
    %54 = arith.addf %53, %52 : vector<8x128xf32>
    %55 = arith.divf %53, %54 : vector<8x128xf32>
    %cst_25 = arith.constant 2.000000e+00 : f32
    %56 = vector.broadcast %cst_25 : f32 to vector<8x128xf32>
    %57 = arith.mulf %56, %55 : vector<8x128xf32>
    %cst_26 = arith.constant 1.000000e+00 : f32
    %58 = vector.broadcast %cst_26 : f32 to vector<8x128xf32>
    %59 = arith.subf %57, %58 : vector<8x128xf32>
    %60 = arith.select %5, %59, %55 : vector<8x128xi1>, vector<8x128xf32>
    %61 = vector.extract_strided_slice %60 {offsets = [0, 0], sizes = [8, 32], strides = [1, 1]} : vector<8x128xf32> to vector<8x32xf32>
    %62 = vector.extract_strided_slice %60 {offsets = [0, 32], sizes = [8, 32], strides = [1, 1]} : vector<8x128xf32> to vector<8x32xf32>
    %63 = vector.extract_strided_slice %60 {offsets = [0, 64], sizes = [8, 32], strides = [1, 1]} : vector<8x128xf32> to vector<8x32xf32>
    %64 = vector.extract_strided_slice %60 {offsets = [0, 96], sizes = [8, 32], strides = [1, 1]} : vector<8x128xf32> to vector<8x32xf32>
    %65 = arith.mulf %62, %39 : vector<8x32xf32>
    %66 = arith.mulf %61, %63 : vector<8x32xf32>
    %67 = arith.addf %65, %66 : vector<8x32xf32>
    %68 = math.tanh %67 : vector<8x32xf32>
    %69 = arith.mulf %64, %68 : vector<8x32xf32>
    %70 = arith.index_cast %c1_i32 : i32 to index
    %c0_27 = arith.constant 0 : index
    %c0_28 = arith.constant 0 : index
    %71 = vector.load %arg12[%70, %c0_27, %c0_28] : memref<8x8x32xf32, #tpu.memory_space<vmem>>, vector<1x8x32xf32>
    %72 = vector.shape_cast %71 : vector<1x8x32xf32> to vector<8x32xf32>
    %73 = vector.shape_cast %69 : vector<8x32xf32> to vector<1x8x32xf32>
    tpu.vector_store %arg12[%70, %c0_27, %c0_28], %73 {strides = array<i32>} : memref<8x8x32xf32, #tpu.memory_space<vmem>>, vector<1x8x32xf32>,
    %c2_i32 = arith.constant 2 : i32
    %74 = arith.index_cast %c2_i32 : i32 to index
    %c0_29 = arith.constant 0 : index
    %c0_30 = arith.constant 0 : index
    %75 = vector.load %arg11[%74, %c0_29, %c0_30] : memref<8x8x128xf32, #tpu.memory_space<vmem>>, vector<1x8x128xf32>
    %76 = vector.shape_cast %75 : vector<1x8x128xf32> to vector<8x128xf32>
    %cst_31 = arith.constant dense<0.000000e+00> : vector<8x128xf32>
    %77 = tpu.matmul %69, %7, %cst_31 {dimension_numbers = #tpu.dot_dimension_numbers<[1], [0], [0], [1], [0, 0, 1, 1], [], []>} : vector<8x32xf32>, vector<32x128xf32>, vector<8x128xf32> -> vector<8x128xf32>
    %78 = arith.addf %76, %77 : vector<8x128xf32>
    %79 = arith.negf %78 : vector<8x128xf32>
    %80 = math.exp %79 : vector<8x128xf32>
    %cst_32 = arith.constant 1.000000e+00 : f32
    %81 = vector.broadcast %cst_32 : f32 to vector<8x128xf32>
    %82 = arith.addf %81, %80 : vector<8x128xf32>
    %83 = arith.divf %81, %82 : vector<8x128xf32>
    %cst_33 = arith.constant 2.000000e+00 : f32
    %84 = vector.broadcast %cst_33 : f32 to vector<8x128xf32>
    %85 = arith.mulf %84, %83 : vector<8x128xf32>
    %cst_34 = arith.constant 1.000000e+00 : f32
    %86 = vector.broadcast %cst_34 : f32 to vector<8x128xf32>
    %87 = arith.subf %85, %86 : vector<8x128xf32>
    %88 = arith.select %5, %87, %83 : vector<8x128xi1>, vector<8x128xf32>
    %89 = vector.extract_strided_slice %88 {offsets = [0, 0], sizes = [8, 32], strides = [1, 1]} : vector<8x128xf32> to vector<8x32xf32>
    %90 = vector.extract_strided_slice %88 {offsets = [0, 32], sizes = [8, 32], strides = [1, 1]} : vector<8x128xf32> to vector<8x32xf32>
    %91 = vector.extract_strided_slice %88 {offsets = [0, 64], sizes = [8, 32], strides = [1, 1]} : vector<8x128xf32> to vector<8x32xf32>
    %92 = vector.extract_strided_slice %88 {offsets = [0, 96], sizes = [8, 32], strides = [1, 1]} : vector<8x128xf32> to vector<8x32xf32>
    %93 = arith.mulf %90, %67 : vector<8x32xf32>
    %94 = arith.mulf %89, %91 : vector<8x32xf32>
    %95 = arith.addf %93, %94 : vector<8x32xf32>
    %96 = math.tanh %95 : vector<8x32xf32>
    %97 = arith.mulf %92, %96 : vector<8x32xf32>
    %98 = arith.index_cast %c2_i32 : i32 to index
    %c0_35 = arith.constant 0 : index
    %c0_36 = arith.constant 0 : index
    %99 = vector.load %arg12[%98, %c0_35, %c0_36] : memref<8x8x32xf32, #tpu.memory_space<vmem>>, vector<1x8x32xf32>
    %100 = vector.shape_cast %99 : vector<1x8x32xf32> to vector<8x32xf32>
    %101 = vector.shape_cast %97 : vector<8x32xf32> to vector<1x8x32xf32>
    tpu.vector_store %arg12[%98, %c0_35, %c0_36], %101 {strides = array<i32>} : memref<8x8x32xf32, #tpu.memory_space<vmem>>, vector<1x8x32xf32>,
    %c3_i32 = arith.constant 3 : i32
    %102 = arith.index_cast %c3_i32 : i32 to index
    %c0_37 = arith.constant 0 : index
    %c0_38 = arith.constant 0 : index
    %103 = vector.load %arg11[%102, %c0_37, %c0_38] : memref<8x8x128xf32, #tpu.memory_space<vmem>>, vector<1x8x128xf32>
    %104 = vector.shape_cast %103 : vector<1x8x128xf32> to vector<8x128xf32>
    %cst_39 = arith.constant dense<0.000000e+00> : vector<8x128xf32>
    %105 = tpu.matmul %97, %7, %cst_39 {dimension_numbers = #tpu.dot_dimension_numbers<[1], [0], [0], [1], [0, 0, 1, 1], [], []>} : vector<8x32xf32>, vector<32x128xf32>, vector<8x128xf32> -> vector<8x128xf32>
    %106 = arith.addf %104, %105 : vector<8x128xf32>
    %107 = arith.negf %106 : vector<8x128xf32>
    %108 = math.exp %107 : vector<8x128xf32>
    %cst_40 = arith.constant 1.000000e+00 : f32
    %109 = vector.broadcast %cst_40 : f32 to vector<8x128xf32>
    %110 = arith.addf %109, %108 : vector<8x128xf32>
    %111 = arith.divf %109, %110 : vector<8x128xf32>
    %cst_41 = arith.constant 2.000000e+00 : f32
    %112 = vector.broadcast %cst_41 : f32 to vector<8x128xf32>
    %113 = arith.mulf %112, %111 : vector<8x128xf32>
    %cst_42 = arith.constant 1.000000e+00 : f32
    %114 = vector.broadcast %cst_42 : f32 to vector<8x128xf32>
    %115 = arith.subf %113, %114 : vector<8x128xf32>
    %116 = arith.select %5, %115, %111 : vector<8x128xi1>, vector<8x128xf32>
    %117 = vector.extract_strided_slice %116 {offsets = [0, 0], sizes = [8, 32], strides = [1, 1]} : vector<8x128xf32> to vector<8x32xf32>
    %118 = vector.extract_strided_slice %116 {offsets = [0, 32], sizes = [8, 32], strides = [1, 1]} : vector<8x128xf32> to vector<8x32xf32>
    %119 = vector.extract_strided_slice %116 {offsets = [0, 64], sizes = [8, 32], strides = [1, 1]} : vector<8x128xf32> to vector<8x32xf32>
    %120 = vector.extract_strided_slice %116 {offsets = [0, 96], sizes = [8, 32], strides = [1, 1]} : vector<8x128xf32> to vector<8x32xf32>
    %121 = arith.mulf %118, %95 : vector<8x32xf32>
    %122 = arith.mulf %117, %119 : vector<8x32xf32>
    %123 = arith.addf %121, %122 : vector<8x32xf32>
    %124 = math.tanh %123 : vector<8x32xf32>
    %125 = arith.mulf %120, %124 : vector<8x32xf32>
    %126 = arith.index_cast %c3_i32 : i32 to index
    %c0_43 = arith.constant 0 : index
    %c0_44 = arith.constant 0 : index
    %127 = vector.load %arg12[%126, %c0_43, %c0_44] : memref<8x8x32xf32, #tpu.memory_space<vmem>>, vector<1x8x32xf32>
    %128 = vector.shape_cast %127 : vector<1x8x32xf32> to vector<8x32xf32>
    %129 = vector.shape_cast %125 : vector<8x32xf32> to vector<1x8x32xf32>
    tpu.vector_store %arg12[%126, %c0_43, %c0_44], %129 {strides = array<i32>} : memref<8x8x32xf32, #tpu.memory_space<vmem>>, vector<1x8x32xf32>,
    %c4_i32 = arith.constant 4 : i32
    %130 = arith.index_cast %c4_i32 : i32 to index
    %c0_45 = arith.constant 0 : index
    %c0_46 = arith.constant 0 : index
    %131 = vector.load %arg11[%130, %c0_45, %c0_46] : memref<8x8x128xf32, #tpu.memory_space<vmem>>, vector<1x8x128xf32>
    %132 = vector.shape_cast %131 : vector<1x8x128xf32> to vector<8x128xf32>
    %cst_47 = arith.constant dense<0.000000e+00> : vector<8x128xf32>
    %133 = tpu.matmul %125, %7, %cst_47 {dimension_numbers = #tpu.dot_dimension_numbers<[1], [0], [0], [1], [0, 0, 1, 1], [], []>} : vector<8x32xf32>, vector<32x128xf32>, vector<8x128xf32> -> vector<8x128xf32>
    %134 = arith.addf %132, %133 : vector<8x128xf32>
    %135 = arith.negf %134 : vector<8x128xf32>
    %136 = math.exp %135 : vector<8x128xf32>
    %cst_48 = arith.constant 1.000000e+00 : f32
    %137 = vector.broadcast %cst_48 : f32 to vector<8x128xf32>
    %138 = arith.addf %137, %136 : vector<8x128xf32>
    %139 = arith.divf %137, %138 : vector<8x128xf32>
    %cst_49 = arith.constant 2.000000e+00 : f32
    %140 = vector.broadcast %cst_49 : f32 to vector<8x128xf32>
    %141 = arith.mulf %140, %139 : vector<8x128xf32>
    %cst_50 = arith.constant 1.000000e+00 : f32
    %142 = vector.broadcast %cst_50 : f32 to vector<8x128xf32>
    %143 = arith.subf %141, %142 : vector<8x128xf32>
    %144 = arith.select %5, %143, %139 : vector<8x128xi1>, vector<8x128xf32>
    %145 = vector.extract_strided_slice %144 {offsets = [0, 0], sizes = [8, 32], strides = [1, 1]} : vector<8x128xf32> to vector<8x32xf32>
    %146 = vector.extract_strided_slice %144 {offsets = [0, 32], sizes = [8, 32], strides = [1, 1]} : vector<8x128xf32> to vector<8x32xf32>
    %147 = vector.extract_strided_slice %144 {offsets = [0, 64], sizes = [8, 32], strides = [1, 1]} : vector<8x128xf32> to vector<8x32xf32>
    %148 = vector.extract_strided_slice %144 {offsets = [0, 96], sizes = [8, 32], strides = [1, 1]} : vector<8x128xf32> to vector<8x32xf32>
    %149 = arith.mulf %146, %123 : vector<8x32xf32>
    %150 = arith.mulf %145, %147 : vector<8x32xf32>
    %151 = arith.addf %149, %150 : vector<8x32xf32>
    %152 = math.tanh %151 : vector<8x32xf32>
    %153 = arith.mulf %148, %152 : vector<8x32xf32>
    %154 = arith.index_cast %c4_i32 : i32 to index
    %c0_51 = arith.constant 0 : index
    %c0_52 = arith.constant 0 : index
    %155 = vector.load %arg12[%154, %c0_51, %c0_52] : memref<8x8x32xf32, #tpu.memory_space<vmem>>, vector<1x8x32xf32>
    %156 = vector.shape_cast %155 : vector<1x8x32xf32> to vector<8x32xf32>
    %157 = vector.shape_cast %153 : vector<8x32xf32> to vector<1x8x32xf32>
    tpu.vector_store %arg12[%154, %c0_51, %c0_52], %157 {strides = array<i32>} : memref<8x8x32xf32, #tpu.memory_space<vmem>>, vector<1x8x32xf32>,
    %c5_i32 = arith.constant 5 : i32
    %158 = arith.index_cast %c5_i32 : i32 to index
    %c0_53 = arith.constant 0 : index
    %c0_54 = arith.constant 0 : index
    %159 = vector.load %arg11[%158, %c0_53, %c0_54] : memref<8x8x128xf32, #tpu.memory_space<vmem>>, vector<1x8x128xf32>
    %160 = vector.shape_cast %159 : vector<1x8x128xf32> to vector<8x128xf32>
    %cst_55 = arith.constant dense<0.000000e+00> : vector<8x128xf32>
    %161 = tpu.matmul %153, %7, %cst_55 {dimension_numbers = #tpu.dot_dimension_numbers<[1], [0], [0], [1], [0, 0, 1, 1], [], []>} : vector<8x32xf32>, vector<32x128xf32>, vector<8x128xf32> -> vector<8x128xf32>
    %162 = arith.addf %160, %161 : vector<8x128xf32>
    %163 = arith.negf %162 : vector<8x128xf32>
    %164 = math.exp %163 : vector<8x128xf32>
    %cst_56 = arith.constant 1.000000e+00 : f32
    %165 = vector.broadcast %cst_56 : f32 to vector<8x128xf32>
    %166 = arith.addf %165, %164 : vector<8x128xf32>
    %167 = arith.divf %165, %166 : vector<8x128xf32>
    %cst_57 = arith.constant 2.000000e+00 : f32
    %168 = vector.broadcast %cst_57 : f32 to vector<8x128xf32>
    %169 = arith.mulf %168, %167 : vector<8x128xf32>
    %cst_58 = arith.constant 1.000000e+00 : f32
    %170 = vector.broadcast %cst_58 : f32 to vector<8x128xf32>
    %171 = arith.subf %169, %170 : vector<8x128xf32>
    %172 = arith.select %5, %171, %167 : vector<8x128xi1>, vector<8x128xf32>
    %173 = vector.extract_strided_slice %172 {offsets = [0, 0], sizes = [8, 32], strides = [1, 1]} : vector<8x128xf32> to vector<8x32xf32>
    %174 = vector.extract_strided_slice %172 {offsets = [0, 32], sizes = [8, 32], strides = [1, 1]} : vector<8x128xf32> to vector<8x32xf32>
    %175 = vector.extract_strided_slice %172 {offsets = [0, 64], sizes = [8, 32], strides = [1, 1]} : vector<8x128xf32> to vector<8x32xf32>
    %176 = vector.extract_strided_slice %172 {offsets = [0, 96], sizes = [8, 32], strides = [1, 1]} : vector<8x128xf32> to vector<8x32xf32>
    %177 = arith.mulf %174, %151 : vector<8x32xf32>
    %178 = arith.mulf %173, %175 : vector<8x32xf32>
    %179 = arith.addf %177, %178 : vector<8x32xf32>
    %180 = math.tanh %179 : vector<8x32xf32>
    %181 = arith.mulf %176, %180 : vector<8x32xf32>
    %182 = arith.index_cast %c5_i32 : i32 to index
    %c0_59 = arith.constant 0 : index
    %c0_60 = arith.constant 0 : index
    %183 = vector.load %arg12[%182, %c0_59, %c0_60] : memref<8x8x32xf32, #tpu.memory_space<vmem>>, vector<1x8x32xf32>
    %184 = vector.shape_cast %183 : vector<1x8x32xf32> to vector<8x32xf32>
    %185 = vector.shape_cast %181 : vector<8x32xf32> to vector<1x8x32xf32>
    tpu.vector_store %arg12[%182, %c0_59, %c0_60], %185 {strides = array<i32>} : memref<8x8x32xf32, #tpu.memory_space<vmem>>, vector<1x8x32xf32>,
    %c6_i32 = arith.constant 6 : i32
    %186 = arith.index_cast %c6_i32 : i32 to index
    %c0_61 = arith.constant 0 : index
    %c0_62 = arith.constant 0 : index
    %187 = vector.load %arg11[%186, %c0_61, %c0_62] : memref<8x8x128xf32, #tpu.memory_space<vmem>>, vector<1x8x128xf32>
    %188 = vector.shape_cast %187 : vector<1x8x128xf32> to vector<8x128xf32>
    %cst_63 = arith.constant dense<0.000000e+00> : vector<8x128xf32>
    %189 = tpu.matmul %181, %7, %cst_63 {dimension_numbers = #tpu.dot_dimension_numbers<[1], [0], [0], [1], [0, 0, 1, 1], [], []>} : vector<8x32xf32>, vector<32x128xf32>, vector<8x128xf32> -> vector<8x128xf32>
    %190 = arith.addf %188, %189 : vector<8x128xf32>
    %191 = arith.negf %190 : vector<8x128xf32>
    %192 = math.exp %191 : vector<8x128xf32>
    %cst_64 = arith.constant 1.000000e+00 : f32
    %193 = vector.broadcast %cst_64 : f32 to vector<8x128xf32>
    %194 = arith.addf %193, %192 : vector<8x128xf32>
    %195 = arith.divf %193, %194 : vector<8x128xf32>
    %cst_65 = arith.constant 2.000000e+00 : f32
    %196 = vector.broadcast %cst_65 : f32 to vector<8x128xf32>
    %197 = arith.mulf %196, %195 : vector<8x128xf32>
    %cst_66 = arith.constant 1.000000e+00 : f32
    %198 = vector.broadcast %cst_66 : f32 to vector<8x128xf32>
    %199 = arith.subf %197, %198 : vector<8x128xf32>
    %200 = arith.select %5, %199, %195 : vector<8x128xi1>, vector<8x128xf32>
    %201 = vector.extract_strided_slice %200 {offsets = [0, 0], sizes = [8, 32], strides = [1, 1]} : vector<8x128xf32> to vector<8x32xf32>
    %202 = vector.extract_strided_slice %200 {offsets = [0, 32], sizes = [8, 32], strides = [1, 1]} : vector<8x128xf32> to vector<8x32xf32>
    %203 = vector.extract_strided_slice %200 {offsets = [0, 64], sizes = [8, 32], strides = [1, 1]} : vector<8x128xf32> to vector<8x32xf32>
    %204 = vector.extract_strided_slice %200 {offsets = [0, 96], sizes = [8, 32], strides = [1, 1]} : vector<8x128xf32> to vector<8x32xf32>
    %205 = arith.mulf %202, %179 : vector<8x32xf32>
    %206 = arith.mulf %201, %203 : vector<8x32xf32>
    %207 = arith.addf %205, %206 : vector<8x32xf32>
    %208 = math.tanh %207 : vector<8x32xf32>
    %209 = arith.mulf %204, %208 : vector<8x32xf32>
    %210 = arith.index_cast %c6_i32 : i32 to index
    %c0_67 = arith.constant 0 : index
    %c0_68 = arith.constant 0 : index
    %211 = vector.load %arg12[%210, %c0_67, %c0_68] : memref<8x8x32xf32, #tpu.memory_space<vmem>>, vector<1x8x32xf32>
    %212 = vector.shape_cast %211 : vector<1x8x32xf32> to vector<8x32xf32>
    %213 = vector.shape_cast %209 : vector<8x32xf32> to vector<1x8x32xf32>
    tpu.vector_store %arg12[%210, %c0_67, %c0_68], %213 {strides = array<i32>} : memref<8x8x32xf32, #tpu.memory_space<vmem>>, vector<1x8x32xf32>,
    %c7_i32 = arith.constant 7 : i32
    %214 = arith.index_cast %c7_i32 : i32 to index
    %c0_69 = arith.constant 0 : index
    %c0_70 = arith.constant 0 : index
    %215 = vector.load %arg11[%214, %c0_69, %c0_70] : memref<8x8x128xf32, #tpu.memory_space<vmem>>, vector<1x8x128xf32>
    %216 = vector.shape_cast %215 : vector<1x8x128xf32> to vector<8x128xf32>
    %cst_71 = arith.constant dense<0.000000e+00> : vector<8x128xf32>
    %217 = tpu.matmul %209, %7, %cst_71 {dimension_numbers = #tpu.dot_dimension_numbers<[1], [0], [0], [1], [0, 0, 1, 1], [], []>} : vector<8x32xf32>, vector<32x128xf32>, vector<8x128xf32> -> vector<8x128xf32>
    %218 = arith.addf %216, %217 : vector<8x128xf32>
    %219 = arith.negf %218 : vector<8x128xf32>
    %220 = math.exp %219 : vector<8x128xf32>
    %cst_72 = arith.constant 1.000000e+00 : f32
    %221 = vector.broadcast %cst_72 : f32 to vector<8x128xf32>
    %222 = arith.addf %221, %220 : vector<8x128xf32>
    %223 = arith.divf %221, %222 : vector<8x128xf32>
    %cst_73 = arith.constant 2.000000e+00 : f32
    %224 = vector.broadcast %cst_73 : f32 to vector<8x128xf32>
    %225 = arith.mulf %224, %223 : vector<8x128xf32>
    %cst_74 = arith.constant 1.000000e+00 : f32
    %226 = vector.broadcast %cst_74 : f32 to vector<8x128xf32>
    %227 = arith.subf %225, %226 : vector<8x128xf32>
    %228 = arith.select %5, %227, %223 : vector<8x128xi1>, vector<8x128xf32>
    %229 = vector.extract_strided_slice %228 {offsets = [0, 0], sizes = [8, 32], strides = [1, 1]} : vector<8x128xf32> to vector<8x32xf32>
    %230 = vector.extract_strided_slice %228 {offsets = [0, 32], sizes = [8, 32], strides = [1, 1]} : vector<8x128xf32> to vector<8x32xf32>
    %231 = vector.extract_strided_slice %228 {offsets = [0, 64], sizes = [8, 32], strides = [1, 1]} : vector<8x128xf32> to vector<8x32xf32>
    %232 = vector.extract_strided_slice %228 {offsets = [0, 96], sizes = [8, 32], strides = [1, 1]} : vector<8x128xf32> to vector<8x32xf32>
    %233 = arith.mulf %230, %207 : vector<8x32xf32>
    %234 = arith.mulf %229, %231 : vector<8x32xf32>
    %235 = arith.addf %233, %234 : vector<8x32xf32>
    %236 = math.tanh %235 : vector<8x32xf32>
    %237 = arith.mulf %232, %236 : vector<8x32xf32>
    %238 = arith.index_cast %c7_i32 : i32 to index
    %c0_75 = arith.constant 0 : index
    %c0_76 = arith.constant 0 : index
    %239 = vector.load %arg12[%238, %c0_75, %c0_76] : memref<8x8x32xf32, #tpu.memory_space<vmem>>, vector<1x8x32xf32>
    %240 = vector.shape_cast %239 : vector<1x8x32xf32> to vector<8x32xf32>
    %241 = vector.shape_cast %237 : vector<8x32xf32> to vector<1x8x32xf32>
    tpu.vector_store %arg12[%238, %c0_75, %c0_76], %241 {strides = array<i32>} : memref<8x8x32xf32, #tpu.memory_space<vmem>>, vector<1x8x32xf32>,
    %c8_i32 = arith.constant 8 : i32
    %c0_77 = arith.constant 0 : index
    %c0_78 = arith.constant 0 : index
    %242 = vector.load %arg5[%c0_77, %c0_78] : memref<32x128xf32, #tpu.memory_space<vmem>>, vector<32x128xf32>
    %c0_79 = arith.constant 0 : index
    %c0_80 = arith.constant 0 : index
    %243 = vector.load %arg6[%c0_79, %c0_80] : memref<32x128xf32, #tpu.memory_space<vmem>>, vector<32x128xf32>
    %c0_81 = arith.constant 0 : index
    %c0_82 = arith.constant 0 : index
    %244 = vector.load %arg7[%c0_81, %c0_82] : memref<1x128xf32, #tpu.memory_space<vmem>>, vector<1x128xf32>
    %c0_83 = arith.constant 0 : index
    %c0_84 = arith.constant 0 : index
    %c0_85 = arith.constant 0 : index
    %245 = vector.load %arg12[%c0_83, %c0_84, %c0_85] : memref<8x8x32xf32, #tpu.memory_space<vmem>>, vector<8x8x32xf32>
    %246 = vector.shape_cast %245 : vector<8x8x32xf32> to vector<64x32xf32>
    %cst_86 = arith.constant dense<0.000000e+00> : vector<64x128xf32>
    %247 = tpu.matmul %246, %242, %cst_86 {dimension_numbers = #tpu.dot_dimension_numbers<[1], [0], [0], [1], [0, 0, 1, 1], [], []>} : vector<64x32xf32>, vector<32x128xf32>, vector<64x128xf32> -> vector<64x128xf32>
    %248 = vector.broadcast %244 : vector<1x128xf32> to vector<64x128xf32>
    %249 = arith.addf %247, %248 : vector<64x128xf32>
    %250 = vector.shape_cast %249 : vector<64x128xf32> to vector<8x8x128xf32>
    %c0_87 = arith.constant 0 : index
    %c0_88 = arith.constant 0 : index
    %c0_89 = arith.constant 0 : index
    %251 = vector.load %arg11[%c0_87, %c0_88, %c0_89] : memref<8x8x128xf32, #tpu.memory_space<vmem>>, vector<8x8x128xf32>
    tpu.vector_store %arg11[%c0_87, %c0_88, %c0_89], %250 {strides = array<i32>} : memref<8x8x128xf32, #tpu.memory_space<vmem>>, vector<8x8x128xf32>,
    %cst_90 = arith.constant 0.000000e+00 : f32
    %252 = vector.broadcast %cst_90 : f32 to vector<8x32xf32>
    %cst_91 = arith.constant 0.000000e+00 : f32
    %253 = vector.broadcast %cst_91 : f32 to vector<8x32xf32>
    %c0_i32_92 = arith.constant 0 : i32
    %254 = arith.index_cast %c0_i32_92 : i32 to index
    %c0_93 = arith.constant 0 : index
    %c0_94 = arith.constant 0 : index
    %255 = vector.load %arg11[%254, %c0_93, %c0_94] : memref<8x8x128xf32, #tpu.memory_space<vmem>>, vector<1x8x128xf32>
    %256 = vector.shape_cast %255 : vector<1x8x128xf32> to vector<8x128xf32>
    %cst_95 = arith.constant dense<0.000000e+00> : vector<8x128xf32>
    %257 = tpu.matmul %252, %243, %cst_95 {dimension_numbers = #tpu.dot_dimension_numbers<[1], [0], [0], [1], [0, 0, 1, 1], [], []>} : vector<8x32xf32>, vector<32x128xf32>, vector<8x128xf32> -> vector<8x128xf32>
    %258 = arith.addf %256, %257 : vector<8x128xf32>
    %259 = arith.negf %258 : vector<8x128xf32>
    %260 = math.exp %259 : vector<8x128xf32>
    %cst_96 = arith.constant 1.000000e+00 : f32
    %261 = vector.broadcast %cst_96 : f32 to vector<8x128xf32>
    %262 = arith.addf %261, %260 : vector<8x128xf32>
    %263 = arith.divf %261, %262 : vector<8x128xf32>
    %cst_97 = arith.constant 2.000000e+00 : f32
    %264 = vector.broadcast %cst_97 : f32 to vector<8x128xf32>
    %265 = arith.mulf %264, %263 : vector<8x128xf32>
    %cst_98 = arith.constant 1.000000e+00 : f32
    %266 = vector.broadcast %cst_98 : f32 to vector<8x128xf32>
    %267 = arith.subf %265, %266 : vector<8x128xf32>
    %268 = arith.select %5, %267, %263 : vector<8x128xi1>, vector<8x128xf32>
    %269 = vector.extract_strided_slice %268 {offsets = [0, 0], sizes = [8, 32], strides = [1, 1]} : vector<8x128xf32> to vector<8x32xf32>
    %270 = vector.extract_strided_slice %268 {offsets = [0, 32], sizes = [8, 32], strides = [1, 1]} : vector<8x128xf32> to vector<8x32xf32>
    %271 = vector.extract_strided_slice %268 {offsets = [0, 64], sizes = [8, 32], strides = [1, 1]} : vector<8x128xf32> to vector<8x32xf32>
    %272 = vector.extract_strided_slice %268 {offsets = [0, 96], sizes = [8, 32], strides = [1, 1]} : vector<8x128xf32> to vector<8x32xf32>
    %273 = arith.mulf %270, %253 : vector<8x32xf32>
    %274 = arith.mulf %269, %271 : vector<8x32xf32>
    %275 = arith.addf %273, %274 : vector<8x32xf32>
    %276 = math.tanh %275 : vector<8x32xf32>
    %277 = arith.mulf %272, %276 : vector<8x32xf32>
    %c1_i32_99 = arith.constant 1 : i32
    %278 = arith.index_cast %c1_i32_99 : i32 to index
    %c0_100 = arith.constant 0 : index
    %c0_101 = arith.constant 0 : index
    %279 = vector.load %arg11[%278, %c0_100, %c0_101] : memref<8x8x128xf32, #tpu.memory_space<vmem>>, vector<1x8x128xf32>
    %280 = vector.shape_cast %279 : vector<1x8x128xf32> to vector<8x128xf32>
    %cst_102 = arith.constant dense<0.000000e+00> : vector<8x128xf32>
    %281 = tpu.matmul %277, %243, %cst_102 {dimension_numbers = #tpu.dot_dimension_numbers<[1], [0], [0], [1], [0, 0, 1, 1], [], []>} : vector<8x32xf32>, vector<32x128xf32>, vector<8x128xf32> -> vector<8x128xf32>
    %282 = arith.addf %280, %281 : vector<8x128xf32>
    %283 = arith.negf %282 : vector<8x128xf32>
    %284 = math.exp %283 : vector<8x128xf32>
    %cst_103 = arith.constant 1.000000e+00 : f32
    %285 = vector.broadcast %cst_103 : f32 to vector<8x128xf32>
    %286 = arith.addf %285, %284 : vector<8x128xf32>
    %287 = arith.divf %285, %286 : vector<8x128xf32>
    %cst_104 = arith.constant 2.000000e+00 : f32
    %288 = vector.broadcast %cst_104 : f32 to vector<8x128xf32>
    %289 = arith.mulf %288, %287 : vector<8x128xf32>
    %cst_105 = arith.constant 1.000000e+00 : f32
    %290 = vector.broadcast %cst_105 : f32 to vector<8x128xf32>
    %291 = arith.subf %289, %290 : vector<8x128xf32>
    %292 = arith.select %5, %291, %287 : vector<8x128xi1>, vector<8x128xf32>
    %293 = vector.extract_strided_slice %292 {offsets = [0, 0], sizes = [8, 32], strides = [1, 1]} : vector<8x128xf32> to vector<8x32xf32>
    %294 = vector.extract_strided_slice %292 {offsets = [0, 32], sizes = [8, 32], strides = [1, 1]} : vector<8x128xf32> to vector<8x32xf32>
    %295 = vector.extract_strided_slice %292 {offsets = [0, 64], sizes = [8, 32], strides = [1, 1]} : vector<8x128xf32> to vector<8x32xf32>
    %296 = vector.extract_strided_slice %292 {offsets = [0, 96], sizes = [8, 32], strides = [1, 1]} : vector<8x128xf32> to vector<8x32xf32>
    %297 = arith.mulf %294, %275 : vector<8x32xf32>
    %298 = arith.mulf %293, %295 : vector<8x32xf32>
    %299 = arith.addf %297, %298 : vector<8x32xf32>
    %300 = math.tanh %299 : vector<8x32xf32>
    %301 = arith.mulf %296, %300 : vector<8x32xf32>
    %c2_i32_106 = arith.constant 2 : i32
    %302 = arith.index_cast %c2_i32_106 : i32 to index
    %c0_107 = arith.constant 0 : index
    %c0_108 = arith.constant 0 : index
    %303 = vector.load %arg11[%302, %c0_107, %c0_108] : memref<8x8x128xf32, #tpu.memory_space<vmem>>, vector<1x8x128xf32>
    %304 = vector.shape_cast %303 : vector<1x8x128xf32> to vector<8x128xf32>
    %cst_109 = arith.constant dense<0.000000e+00> : vector<8x128xf32>
    %305 = tpu.matmul %301, %243, %cst_109 {dimension_numbers = #tpu.dot_dimension_numbers<[1], [0], [0], [1], [0, 0, 1, 1], [], []>} : vector<8x32xf32>, vector<32x128xf32>, vector<8x128xf32> -> vector<8x128xf32>
    %306 = arith.addf %304, %305 : vector<8x128xf32>
    %307 = arith.negf %306 : vector<8x128xf32>
    %308 = math.exp %307 : vector<8x128xf32>
    %cst_110 = arith.constant 1.000000e+00 : f32
    %309 = vector.broadcast %cst_110 : f32 to vector<8x128xf32>
    %310 = arith.addf %309, %308 : vector<8x128xf32>
    %311 = arith.divf %309, %310 : vector<8x128xf32>
    %cst_111 = arith.constant 2.000000e+00 : f32
    %312 = vector.broadcast %cst_111 : f32 to vector<8x128xf32>
    %313 = arith.mulf %312, %311 : vector<8x128xf32>
    %cst_112 = arith.constant 1.000000e+00 : f32
    %314 = vector.broadcast %cst_112 : f32 to vector<8x128xf32>
    %315 = arith.subf %313, %314 : vector<8x128xf32>
    %316 = arith.select %5, %315, %311 : vector<8x128xi1>, vector<8x128xf32>
    %317 = vector.extract_strided_slice %316 {offsets = [0, 0], sizes = [8, 32], strides = [1, 1]} : vector<8x128xf32> to vector<8x32xf32>
    %318 = vector.extract_strided_slice %316 {offsets = [0, 32], sizes = [8, 32], strides = [1, 1]} : vector<8x128xf32> to vector<8x32xf32>
    %319 = vector.extract_strided_slice %316 {offsets = [0, 64], sizes = [8, 32], strides = [1, 1]} : vector<8x128xf32> to vector<8x32xf32>
    %320 = vector.extract_strided_slice %316 {offsets = [0, 96], sizes = [8, 32], strides = [1, 1]} : vector<8x128xf32> to vector<8x32xf32>
    %321 = arith.mulf %318, %299 : vector<8x32xf32>
    %322 = arith.mulf %317, %319 : vector<8x32xf32>
    %323 = arith.addf %321, %322 : vector<8x32xf32>
    %324 = math.tanh %323 : vector<8x32xf32>
    %325 = arith.mulf %320, %324 : vector<8x32xf32>
    %c3_i32_113 = arith.constant 3 : i32
    %326 = arith.index_cast %c3_i32_113 : i32 to index
    %c0_114 = arith.constant 0 : index
    %c0_115 = arith.constant 0 : index
    %327 = vector.load %arg11[%326, %c0_114, %c0_115] : memref<8x8x128xf32, #tpu.memory_space<vmem>>, vector<1x8x128xf32>
    %328 = vector.shape_cast %327 : vector<1x8x128xf32> to vector<8x128xf32>
    %cst_116 = arith.constant dense<0.000000e+00> : vector<8x128xf32>
    %329 = tpu.matmul %325, %243, %cst_116 {dimension_numbers = #tpu.dot_dimension_numbers<[1], [0], [0], [1], [0, 0, 1, 1], [], []>} : vector<8x32xf32>, vector<32x128xf32>, vector<8x128xf32> -> vector<8x128xf32>
    %330 = arith.addf %328, %329 : vector<8x128xf32>
    %331 = arith.negf %330 : vector<8x128xf32>
    %332 = math.exp %331 : vector<8x128xf32>
    %cst_117 = arith.constant 1.000000e+00 : f32
    %333 = vector.broadcast %cst_117 : f32 to vector<8x128xf32>
    %334 = arith.addf %333, %332 : vector<8x128xf32>
    %335 = arith.divf %333, %334 : vector<8x128xf32>
    %cst_118 = arith.constant 2.000000e+00 : f32
    %336 = vector.broadcast %cst_118 : f32 to vector<8x128xf32>
    %337 = arith.mulf %336, %335 : vector<8x128xf32>
    %cst_119 = arith.constant 1.000000e+00 : f32
    %338 = vector.broadcast %cst_119 : f32 to vector<8x128xf32>
    %339 = arith.subf %337, %338 : vector<8x128xf32>
    %340 = arith.select %5, %339, %335 : vector<8x128xi1>, vector<8x128xf32>
    %341 = vector.extract_strided_slice %340 {offsets = [0, 0], sizes = [8, 32], strides = [1, 1]} : vector<8x128xf32> to vector<8x32xf32>
    %342 = vector.extract_strided_slice %340 {offsets = [0, 32], sizes = [8, 32], strides = [1, 1]} : vector<8x128xf32> to vector<8x32xf32>
    %343 = vector.extract_strided_slice %340 {offsets = [0, 64], sizes = [8, 32], strides = [1, 1]} : vector<8x128xf32> to vector<8x32xf32>
    %344 = vector.extract_strided_slice %340 {offsets = [0, 96], sizes = [8, 32], strides = [1, 1]} : vector<8x128xf32> to vector<8x32xf32>
    %345 = arith.mulf %342, %323 : vector<8x32xf32>
    %346 = arith.mulf %341, %343 : vector<8x32xf32>
    %347 = arith.addf %345, %346 : vector<8x32xf32>
    %348 = math.tanh %347 : vector<8x32xf32>
    %349 = arith.mulf %344, %348 : vector<8x32xf32>
    %c4_i32_120 = arith.constant 4 : i32
    %350 = arith.index_cast %c4_i32_120 : i32 to index
    %c0_121 = arith.constant 0 : index
    %c0_122 = arith.constant 0 : index
    %351 = vector.load %arg11[%350, %c0_121, %c0_122] : memref<8x8x128xf32, #tpu.memory_space<vmem>>, vector<1x8x128xf32>
    %352 = vector.shape_cast %351 : vector<1x8x128xf32> to vector<8x128xf32>
    %cst_123 = arith.constant dense<0.000000e+00> : vector<8x128xf32>
    %353 = tpu.matmul %349, %243, %cst_123 {dimension_numbers = #tpu.dot_dimension_numbers<[1], [0], [0], [1], [0, 0, 1, 1], [], []>} : vector<8x32xf32>, vector<32x128xf32>, vector<8x128xf32> -> vector<8x128xf32>
    %354 = arith.addf %352, %353 : vector<8x128xf32>
    %355 = arith.negf %354 : vector<8x128xf32>
    %356 = math.exp %355 : vector<8x128xf32>
    %cst_124 = arith.constant 1.000000e+00 : f32
    %357 = vector.broadcast %cst_124 : f32 to vector<8x128xf32>
    %358 = arith.addf %357, %356 : vector<8x128xf32>
    %359 = arith.divf %357, %358 : vector<8x128xf32>
    %cst_125 = arith.constant 2.000000e+00 : f32
    %360 = vector.broadcast %cst_125 : f32 to vector<8x128xf32>
    %361 = arith.mulf %360, %359 : vector<8x128xf32>
    %cst_126 = arith.constant 1.000000e+00 : f32
    %362 = vector.broadcast %cst_126 : f32 to vector<8x128xf32>
    %363 = arith.subf %361, %362 : vector<8x128xf32>
    %364 = arith.select %5, %363, %359 : vector<8x128xi1>, vector<8x128xf32>
    %365 = vector.extract_strided_slice %364 {offsets = [0, 0], sizes = [8, 32], strides = [1, 1]} : vector<8x128xf32> to vector<8x32xf32>
    %366 = vector.extract_strided_slice %364 {offsets = [0, 32], sizes = [8, 32], strides = [1, 1]} : vector<8x128xf32> to vector<8x32xf32>
    %367 = vector.extract_strided_slice %364 {offsets = [0, 64], sizes = [8, 32], strides = [1, 1]} : vector<8x128xf32> to vector<8x32xf32>
    %368 = vector.extract_strided_slice %364 {offsets = [0, 96], sizes = [8, 32], strides = [1, 1]} : vector<8x128xf32> to vector<8x32xf32>
    %369 = arith.mulf %366, %347 : vector<8x32xf32>
    %370 = arith.mulf %365, %367 : vector<8x32xf32>
    %371 = arith.addf %369, %370 : vector<8x32xf32>
    %372 = math.tanh %371 : vector<8x32xf32>
    %373 = arith.mulf %368, %372 : vector<8x32xf32>
    %c5_i32_127 = arith.constant 5 : i32
    %374 = arith.index_cast %c5_i32_127 : i32 to index
    %c0_128 = arith.constant 0 : index
    %c0_129 = arith.constant 0 : index
    %375 = vector.load %arg11[%374, %c0_128, %c0_129] : memref<8x8x128xf32, #tpu.memory_space<vmem>>, vector<1x8x128xf32>
    %376 = vector.shape_cast %375 : vector<1x8x128xf32> to vector<8x128xf32>
    %cst_130 = arith.constant dense<0.000000e+00> : vector<8x128xf32>
    %377 = tpu.matmul %373, %243, %cst_130 {dimension_numbers = #tpu.dot_dimension_numbers<[1], [0], [0], [1], [0, 0, 1, 1], [], []>} : vector<8x32xf32>, vector<32x128xf32>, vector<8x128xf32> -> vector<8x128xf32>
    %378 = arith.addf %376, %377 : vector<8x128xf32>
    %379 = arith.negf %378 : vector<8x128xf32>
    %380 = math.exp %379 : vector<8x128xf32>
    %cst_131 = arith.constant 1.000000e+00 : f32
    %381 = vector.broadcast %cst_131 : f32 to vector<8x128xf32>
    %382 = arith.addf %381, %380 : vector<8x128xf32>
    %383 = arith.divf %381, %382 : vector<8x128xf32>
    %cst_132 = arith.constant 2.000000e+00 : f32
    %384 = vector.broadcast %cst_132 : f32 to vector<8x128xf32>
    %385 = arith.mulf %384, %383 : vector<8x128xf32>
    %cst_133 = arith.constant 1.000000e+00 : f32
    %386 = vector.broadcast %cst_133 : f32 to vector<8x128xf32>
    %387 = arith.subf %385, %386 : vector<8x128xf32>
    %388 = arith.select %5, %387, %383 : vector<8x128xi1>, vector<8x128xf32>
    %389 = vector.extract_strided_slice %388 {offsets = [0, 0], sizes = [8, 32], strides = [1, 1]} : vector<8x128xf32> to vector<8x32xf32>
    %390 = vector.extract_strided_slice %388 {offsets = [0, 32], sizes = [8, 32], strides = [1, 1]} : vector<8x128xf32> to vector<8x32xf32>
    %391 = vector.extract_strided_slice %388 {offsets = [0, 64], sizes = [8, 32], strides = [1, 1]} : vector<8x128xf32> to vector<8x32xf32>
    %392 = vector.extract_strided_slice %388 {offsets = [0, 96], sizes = [8, 32], strides = [1, 1]} : vector<8x128xf32> to vector<8x32xf32>
    %393 = arith.mulf %390, %371 : vector<8x32xf32>
    %394 = arith.mulf %389, %391 : vector<8x32xf32>
    %395 = arith.addf %393, %394 : vector<8x32xf32>
    %396 = math.tanh %395 : vector<8x32xf32>
    %397 = arith.mulf %392, %396 : vector<8x32xf32>
    %c6_i32_134 = arith.constant 6 : i32
    %398 = arith.index_cast %c6_i32_134 : i32 to index
    %c0_135 = arith.constant 0 : index
    %c0_136 = arith.constant 0 : index
    %399 = vector.load %arg11[%398, %c0_135, %c0_136] : memref<8x8x128xf32, #tpu.memory_space<vmem>>, vector<1x8x128xf32>
    %400 = vector.shape_cast %399 : vector<1x8x128xf32> to vector<8x128xf32>
    %cst_137 = arith.constant dense<0.000000e+00> : vector<8x128xf32>
    %401 = tpu.matmul %397, %243, %cst_137 {dimension_numbers = #tpu.dot_dimension_numbers<[1], [0], [0], [1], [0, 0, 1, 1], [], []>} : vector<8x32xf32>, vector<32x128xf32>, vector<8x128xf32> -> vector<8x128xf32>
    %402 = arith.addf %400, %401 : vector<8x128xf32>
    %403 = arith.negf %402 : vector<8x128xf32>
    %404 = math.exp %403 : vector<8x128xf32>
    %cst_138 = arith.constant 1.000000e+00 : f32
    %405 = vector.broadcast %cst_138 : f32 to vector<8x128xf32>
    %406 = arith.addf %405, %404 : vector<8x128xf32>
    %407 = arith.divf %405, %406 : vector<8x128xf32>
    %cst_139 = arith.constant 2.000000e+00 : f32
    %408 = vector.broadcast %cst_139 : f32 to vector<8x128xf32>
    %409 = arith.mulf %408, %407 : vector<8x128xf32>
    %cst_140 = arith.constant 1.000000e+00 : f32
    %410 = vector.broadcast %cst_140 : f32 to vector<8x128xf32>
    %411 = arith.subf %409, %410 : vector<8x128xf32>
    %412 = arith.select %5, %411, %407 : vector<8x128xi1>, vector<8x128xf32>
    %413 = vector.extract_strided_slice %412 {offsets = [0, 0], sizes = [8, 32], strides = [1, 1]} : vector<8x128xf32> to vector<8x32xf32>
    %414 = vector.extract_strided_slice %412 {offsets = [0, 32], sizes = [8, 32], strides = [1, 1]} : vector<8x128xf32> to vector<8x32xf32>
    %415 = vector.extract_strided_slice %412 {offsets = [0, 64], sizes = [8, 32], strides = [1, 1]} : vector<8x128xf32> to vector<8x32xf32>
    %416 = vector.extract_strided_slice %412 {offsets = [0, 96], sizes = [8, 32], strides = [1, 1]} : vector<8x128xf32> to vector<8x32xf32>
    %417 = arith.mulf %414, %395 : vector<8x32xf32>
    %418 = arith.mulf %413, %415 : vector<8x32xf32>
    %419 = arith.addf %417, %418 : vector<8x32xf32>
    %420 = math.tanh %419 : vector<8x32xf32>
    %421 = arith.mulf %416, %420 : vector<8x32xf32>
    %c7_i32_141 = arith.constant 7 : i32
    %422 = arith.index_cast %c7_i32_141 : i32 to index
    %c0_142 = arith.constant 0 : index
    %c0_143 = arith.constant 0 : index
    %423 = vector.load %arg11[%422, %c0_142, %c0_143] : memref<8x8x128xf32, #tpu.memory_space<vmem>>, vector<1x8x128xf32>
    %424 = vector.shape_cast %423 : vector<1x8x128xf32> to vector<8x128xf32>
    %cst_144 = arith.constant dense<0.000000e+00> : vector<8x128xf32>
    %425 = tpu.matmul %421, %243, %cst_144 {dimension_numbers = #tpu.dot_dimension_numbers<[1], [0], [0], [1], [0, 0, 1, 1], [], []>} : vector<8x32xf32>, vector<32x128xf32>, vector<8x128xf32> -> vector<8x128xf32>
    %426 = arith.addf %424, %425 : vector<8x128xf32>
    %427 = arith.negf %426 : vector<8x128xf32>
    %428 = math.exp %427 : vector<8x128xf32>
    %cst_145 = arith.constant 1.000000e+00 : f32
    %429 = vector.broadcast %cst_145 : f32 to vector<8x128xf32>
    %430 = arith.addf %429, %428 : vector<8x128xf32>
    %431 = arith.divf %429, %430 : vector<8x128xf32>
    %cst_146 = arith.constant 2.000000e+00 : f32
    %432 = vector.broadcast %cst_146 : f32 to vector<8x128xf32>
    %433 = arith.mulf %432, %431 : vector<8x128xf32>
    %cst_147 = arith.constant 1.000000e+00 : f32
    %434 = vector.broadcast %cst_147 : f32 to vector<8x128xf32>
    %435 = arith.subf %433, %434 : vector<8x128xf32>
    %436 = arith.select %5, %435, %431 : vector<8x128xi1>, vector<8x128xf32>
    %437 = vector.extract_strided_slice %436 {offsets = [0, 0], sizes = [8, 32], strides = [1, 1]} : vector<8x128xf32> to vector<8x32xf32>
    %438 = vector.extract_strided_slice %436 {offsets = [0, 32], sizes = [8, 32], strides = [1, 1]} : vector<8x128xf32> to vector<8x32xf32>
    %439 = vector.extract_strided_slice %436 {offsets = [0, 64], sizes = [8, 32], strides = [1, 1]} : vector<8x128xf32> to vector<8x32xf32>
    %440 = vector.extract_strided_slice %436 {offsets = [0, 96], sizes = [8, 32], strides = [1, 1]} : vector<8x128xf32> to vector<8x32xf32>
    %441 = arith.mulf %438, %419 : vector<8x32xf32>
    %442 = arith.mulf %437, %439 : vector<8x32xf32>
    %443 = arith.addf %441, %442 : vector<8x32xf32>
    %444 = math.tanh %443 : vector<8x32xf32>
    %445 = arith.mulf %440, %444 : vector<8x32xf32>
    %c8_i32_148 = arith.constant 8 : i32
    %c0_149 = arith.constant 0 : index
    %c0_150 = arith.constant 0 : index
    %446 = vector.load %arg8[%c0_149, %c0_150] : memref<32x128xf32, #tpu.memory_space<vmem>>, vector<32x128xf32>
    %cst_151 = arith.constant dense<0.000000e+00> : vector<8x128xf32>
    %447 = tpu.matmul %445, %446, %cst_151 {dimension_numbers = #tpu.dot_dimension_numbers<[1], [0], [0], [1], [0, 0, 1, 1], [], []>} : vector<8x32xf32>, vector<32x128xf32>, vector<8x128xf32> -> vector<8x128xf32>
    %c0_152 = arith.constant 0 : index
    %c0_153 = arith.constant 0 : index
    %448 = vector.load %arg9[%c0_152, %c0_153] : memref<1x128xf32, #tpu.memory_space<vmem>>, vector<1x128xf32>
    %449 = vector.broadcast %448 : vector<1x128xf32> to vector<8x128xf32>
    %450 = arith.addf %447, %449 : vector<8x128xf32>
    %c0_154 = arith.constant 0 : index
    %c0_155 = arith.constant 0 : index
    %451 = vector.load %arg10[%c0_154, %c0_155] : memref<8x128xf32, #tpu.memory_space<vmem>>, vector<8x128xf32>
    tpu.vector_store %arg10[%c0_154, %c0_155], %450 {strides = array<i32>} : memref<8x128xf32, #tpu.memory_space<vmem>>, vector<8x128xf32>,
    return
  }
  func.func @transform_0(%arg0: i32) -> (i32, i32, i32) {
    %c0_i32 = arith.constant 0 : i32
    %c0_i32_0 = arith.constant 0 : i32
    %c0_i32_1 = arith.constant 0 : i32
    return %c0_i32, %arg0, %c0_i32_0 : i32, i32, i32
  }
  func.func @transform_1(%arg0: i32) -> (i32, i32) {
    %c0_i32 = arith.constant 0 : i32
    %c0_i32_0 = arith.constant 0 : i32
    %c0_i32_1 = arith.constant 0 : i32
    return %c0_i32, %c0_i32_0 : i32, i32
  }
  func.func @transform_2(%arg0: i32) -> (i32, i32) {
    %c0_i32 = arith.constant 0 : i32
    %c0_i32_0 = arith.constant 0 : i32
    %c0_i32_1 = arith.constant 0 : i32
    return %c0_i32, %c0_i32_0 : i32, i32
  }
  func.func @transform_3(%arg0: i32) -> (i32, i32) {
    %c0_i32 = arith.constant 0 : i32
    %c0_i32_0 = arith.constant 0 : i32
    %c0_i32_1 = arith.constant 0 : i32
    return %c0_i32, %c0_i32_0 : i32, i32
  }
  func.func @transform_4(%arg0: i32) -> (i32, i32) {
    %c0_i32 = arith.constant 0 : i32
    %c0_i32_0 = arith.constant 0 : i32
    %c0_i32_1 = arith.constant 0 : i32
    return %c0_i32, %c0_i32_0 : i32, i32
  }
  func.func @transform_5(%arg0: i32) -> (i32, i32) {
    %c0_i32 = arith.constant 0 : i32
    %c0_i32_0 = arith.constant 0 : i32
    %c0_i32_1 = arith.constant 0 : i32
    return %c0_i32, %c0_i32_0 : i32, i32
  }
  func.func @transform_6(%arg0: i32) -> (i32, i32) {
    %c0_i32 = arith.constant 0 : i32
    %c0_i32_0 = arith.constant 0 : i32
    %c0_i32_1 = arith.constant 0 : i32
    return %c0_i32, %c0_i32_0 : i32, i32
  }
  func.func @transform_7(%arg0: i32) -> (i32, i32) {
    %c0_i32 = arith.constant 0 : i32
    %c0_i32_0 = arith.constant 0 : i32
    %c0_i32_1 = arith.constant 0 : i32
    return %c0_i32, %c0_i32_0 : i32, i32
  }
  func.func @transform_8(%arg0: i32) -> (i32, i32) {
    %c0_i32 = arith.constant 0 : i32
    %c0_i32_0 = arith.constant 0 : i32
    %c0_i32_1 = arith.constant 0 : i32
    return %c0_i32, %c0_i32_0 : i32, i32
  }
  func.func @transform_9(%arg0: i32) -> (i32, i32) {
    %c0_i32 = arith.constant 0 : i32
    %c0_i32_0 = arith.constant 0 : i32
    return %arg0, %c0_i32 : i32, i32
  }
}

</mosaic_0001>

<bundles_post_ra>
// kernel: lstm_classifier_forward.1
= control target key start
LH: loop header
LB: loop body
LE: loop exit
PB: predicated region body
PF: predicated region fallthrough
CT: control target
= control target key end

     0   :  { %14 = vsyncpa [#allocation5], 0  ;;  %s2654_s30 = smov [#allocation4]   ;;  %s3163_s0 = inlined_call_operand.vmem [shape: f32[8,8,8], index: 0, kind: input, shape index: {}]   ;;  %s3164_s1 = inlined_call_operand.vmem [shape: f32[8,128], index: 1, kind: input, shape index: {}]   ;;  %s3165_s2 = inlined_call_operand.vmem [shape: f32[32,128], index: 2, kind: input, shape index: {}]   ;;  %s3166_s3 = inlined_call_operand.vmem [shape: f32[1,128], index: 3, kind: input, shape index: {}]   ;;  %s3167_s4 = inlined_call_operand.vmem [shape: f32[32,128], index: 4, kind: input, shape index: {}]   ;;  %s3168_s5 = inlined_call_operand.vmem [shape: f32[32,128], index: 5, kind: input, shape index: {}]   ;;  %s3169_s6 = inlined_call_operand.vmem [shape: f32[1,128], index: 6, kind: input, shape index: {}]   ;;  %s3170_s7 = inlined_call_operand.hbm [shape: f32[32,128], index: 7, kind: input, shape index: {}]   ;;  %s3171_s8 = inlined_call_operand.vmem [shape: f32[1,128], index: 8, kind: input, shape index: {}]   ;;  %s3172_s9 = inlined_call_operand.vmem [shape: f32[8,128], index: 9, kind: output, shape index: {}]  }
   0x1   :  { %s34_s10 = sshll.u32 %s2654_s30, 4  ;;  %s35_s10 = int_to_ptr.vmem [resolvable:$true] %s34_s10 }
   0x2   :  { %s2640_s11 = scalar_lea.vmem %s35_s10, 512  ;;  %p2645_p1 = scmp.lt.s32.totalorder %s35_s10, %s35_s10 }
   0x3   :  { %p2641_p0 = scmp.ne.s32.totalorder %s35_s10, %s2640_s11  ;;  %p2646_p2 = scmp.lt.s32.totalorder %s2640_s11, %s2640_s11 }
   0x5   :  { %p2647_p3 = por %p2646_p2, %p2645_p1 }
   0x7   :  { %p2648_p4 = pnand %p2647_p3, %p2641_p0 }
   0x9   :  { %2651 = shalt.err (!%p2648_p4)
}
   0xa   :  { %s2655_s12 = smov 128   ;;  %s2656_s13 = smov 8  }
   0xb   :  { %40 = dma.hbm_to_vmem [thread:$0]  %s3170_s7, 512, %s35_s10, [#allocation5], %s2655_s12, %s2655_s12, %s2656_s13  }
   0xc   :  { %2652 = dma.done.wait [#allocation5], 512  }
   0xd   :  { %2653 = vsyncadd [#allocation5], 4294966784  ;;  %v2657_v0 = vmov 0.0   ;;  %vm2658_vm0 = vmmov 0   ;;  %vm71_vm1 = vcmask 64512   ;;  %v51_v1 = vld [vmem:[%s3164_s1] sm:$0xff]  ;;  %v46_v18 = vlaneseq }
   0xe   :  { %2322 = vmatprep.subr.mxu1 %v2657_v0  ;;  %2330 = vmatprep.mubr.msk.f32.mxu1 %vm2658_vm0, %v2657_v0  ;;  %v2723_v2 = vld [vmem:[%s3165_s2 + $0x18] sm:$0xff]  ;;  %v57_v3 = vld [vmem:[%s3163_s0] sm:$0xff]  ;;  %v58_v4 = vld [vmem:[%s3163_s0 + $0x8] sm:$0xff]  ;;  %s2660_s29 = smov 32   ;;  %vm210_vm5 = vcmask 261120  }
   0xf   :  { %2308 = vmatprep.subr.mxu0 %v51_v1  ;;  %2323 = vmatpush3.msra.mxu1 %v2723_v2  ;;  %v2735_v5 = vld [vmem:[%s3165_s2 + $0x10] sm:$0xff]  ;;  %v2743_v6 = vld [vmem:[%s3165_s2 + $0x8] sm:$0xff]  ;;  %v2751_v7 = vld [vmem:[%s3165_s2] sm:$0xff]  ;;  %v47_v19 = vand.u32 127, %v46_v18 }
  0x10   :  { %2309 = vmatpush3.msra.mxu0 %v51_v1  ;;  %2310 = vmatprep.mubr.msk.f32.mxu0 %vm71_vm1, %v57_v3  ;;  %v2779_v9 = vld [vmem:[%s3166_s3] ss:$0 sm:$0xff]  ;;  %s2659_s3 = smov 64   ;;  %v59_v50 = vld [vmem:[%s3163_s0 + $0x10] sm:$0xff]  ;;  %v60_v51 = vld [vmem:[%s3163_s0 + $0x18] sm:$0xff] }
  0x11   :  { %2324 = vmatprep.subr.mxu1 %v2657_v0  ;;  %2311 = vmatmul.mubr.msk.f32.vlgmr.msra.gmra.mxu0 %vm71_vm1, %v58_v4  ;;  %vm48_vm2 = vcmp.ge.s32.totalorder %v47_v19, 64  ;;  %vm49_vm3 = vcmp.lt.s32.totalorder %v47_v19, 96  ;;  %v61_v52 = vld [vmem:[%s3163_s0 + $0x20] sm:$0xff]  ;;  %v62_v53 = vld [vmem:[%s3163_s0 + $0x28] sm:$0xff]  ;;  %v63_v54 = vld [vmem:[%s3163_s0 + $0x30] sm:$0xff] }
  0x12   :  { %2325 = vmatpush3.msra.mxu1 %v2735_v5  ;;  %2344 = vmatprep.subr.mxu0 %v2657_v0  ;;  %vm2782_vm4 = vmand %vm48_vm2, %vm49_vm3  ;;  %v64_v55 = vld [vmem:[%s3163_s0 + $0x38] sm:$0xff]  ;;  %v2044_v22 = vld [vmem:[#allocation4] sm:$0xff] }
  0x13   :  { %2326 = vmatprep.subr.mxu1 %v2657_v0  ;;  %2345 = vmatpush3.msra.mxu0 %v2723_v2 }
  0x14   :  { %2327 = vmatpush3.msra.mxu1 %v2743_v6  ;;  %2346 = vmatprep.subr.mxu0 %v2657_v0 }
  0x15   :  { %2328 = vmatprep.subr.mxu1 %v2657_v0  ;;  %2347 = vmatpush3.msra.mxu0 %v2735_v5 }
  0x16   :  { %2329 = vmatpush3.msra.mxu1 %v2751_v7  ;;  %2348 = vmatprep.subr.mxu0 %v2657_v0 }
  0x17   :  { %2331 = vmatmul.mubr.f32.vlgmr.msra.gmra.mxu1 %v2657_v0  ;;  %2333 = vmatprep.subr.mxu1 %v2657_v0 }
  0x18   :  { %2334 = vmatpush3.msra.mxu1 %v2723_v2  ;;  %2341 = vmatprep.mubr.msk.f32.mxu1 %vm2658_vm0, %v2657_v0 }
  0x19   :  { %2335 = vmatprep.subr.mxu1 %v2657_v0  ;;  %2349 = vmatpush3.msra.mxu0 %v2743_v6 }
  0x1a   :  { %2336 = vmatpush3.msra.mxu1 %v2735_v5  ;;  %2350 = vmatprep.subr.mxu0 %v2657_v0 }
  0x1b   :  { %2337 = vmatprep.subr.mxu1 %v2657_v0  ;;  %2351 = vmatpush3.msra.mxu0 %v2751_v7 }
  0x1c   :  { %2338 = vmatpush3.msra.mxu1 %v2743_v6  ;;  %2366 = vmatprep.subr.mxu0 %v2657_v0 }
  0x1d   :  { %2339 = vmatprep.subr.mxu1 %v2657_v0  ;;  %2313 = vmatprep.mubr.msk.f32.mxu0 %vm71_vm1, %v59_v50 }
  0x1e   :  { %2340 = vmatpush3.msra.mxu1 %v2751_v7  ;;  %2314 = vmatmul.mubr.msk.f32.gmra.mxu0 %vm71_vm1, %v60_v51 }
  0x1f   :  { %2355 = vmatprep.subr.mxu1 %v2657_v0  ;;  %2316 = vmatprep.mubr.msk.f32.mxu0 %vm71_vm1, %v61_v52 }
  0x22   :  { %2317 = vmatmul.mubr.msk.f32.gmra.mxu0 %vm71_vm1, %v62_v53 }
  0x23   :  { %2319 = vmatprep.mubr.msk.f32.mxu0 %vm71_vm1, %v63_v54 }
  0x26   :  { %2320 = vmatmul.mubr.msk.f32.gmra.mxu0 %vm71_vm1, %v64_v55 }
  0x27   :  { %2352 = vmatprep.mubr.msk.f32.mxu0 %vm2658_vm0, %v2657_v0 }
  0xd1   :  { %v2312_v8 = vpop.f32.mrf.mxu0 }
  0xd2   :  { %v168_v34 = vadd.f32 %v2312_v8, %v2779_v9 }
  0xd3   :  { %v162_v10 = vpop.f32.mrf.mxu0 }
  0xd4   :  { %v163_v11 = vadd.f32 %v2779_v9, %v162_v10 }
  0xd7   :  { %v280_v12 = vpop.f32.mrf.mxu1 }
  0xd8   :  { %v284_v13 = vadd.f32 %v280_v12, %v163_v11 }
  0xd9   :  { %v2332_v14 = vpop.f32.mrf.mxu1 }
  0xda   :  { %v2145_v15 = vmul.f32 -1.442695, %v284_v13 }
  0xdc   :  { %2536 = vpow2.f32 %v2145_v15 }
  0xde   :  { %v2315_v60 = vpop.f32.mrf.mxu0 }
  0xe0   :  { %v172_v61 = vpop.f32.mrf.mxu0 }
  0xe1   :  { %v173_v4 = vadd.f32 %v2779_v9, %v172_v61 }
  0xe2   :  { %v2849_v62 = vpop.f32.mrf.mxu0 }
  0xe4   :  { %v2851_v63 = vpop.f32.mrf.mxu0 }
  0xe6   :  { %v2853_v1 = vpop.f32.mrf.mxu0 }
  0xe8   :  { %v2855_v3 = vpop.f32.mrf.mxu0 }
  0xe9   :  { %v2537_v16 = vpop.eup %2536 }
  0xea   :  { %v288_v17 = vadd.f32 1.0, %v2537_v16 }
  0xec   :  { %2538 = vrcp.f32 %v288_v17 }
  0xf9   :  { %v2539_v20 = vpop.eup %2538 }
  0xfa   :  { %v291_v21 = vmul.f32 2.0, %v2539_v20 }
  0xfc   :  { %v2146_v23 = vadd.f32 -1.0, %v291_v21 }
  0xfe   :  { %v293_v24 = vsel %vm2782_vm4, %v2146_v23, %v2539_v20 }
  0xff   :  { %296 = vrot.lane.b32.xlu0 %v293_v24, %s2659_s3  ;;  %v294_v27 = vmul.f32 0.0, %v293_v24 }
 0x171   :  { %v297_v25 = vpop.permute.xlu0 %296 }
 0x172   :  { %v299_v26 = vmul.f32 %v297_v25, %v293_v24 }
 0x174   :  { %301 = vrot.lane.b32.xlu0 %v299_v26, %s2660_s29 }
 0x1e6   :  { %v302_v28 = vpop.permute.xlu0 %301 }
 0x1e7   :  { %v304_v29 = vadd.f32 %v302_v28, %v294_v27 }
 0x1e9   :  { %2540 = vtanh.f32 %v304_v29 }
 0x1f6   :  { %v2541_v30 = vpop.eup %2540 }
 0x1f7   :  { %307 = vrot.lane.b32.xlu1 %v2541_v30, %s2659_s3 }
 0x269   :  { %v308_v31 = vpop.permute.xlu1 %307 }
 0x26a   :  { %v310_v32 = vmul.f32 %v308_v31, %v293_v24 }
 0x26c   :  { %312 = vrot.lane.b32.xlu1 %v310_v32, %s2660_s29 }
 0x2de   :  { %v313_v33 = vpop.permute.xlu1 %312 }
 0x2df   :  { %315 = vst.msk [vmem:[#allocation3] sm:$0xff] %vm210_vm5, %v313_v33  ;;  %2342 = vmatmul.mubr.msk.f32.vlgmr.msra.gmra.mxu1 %vm210_vm5, %v313_v33 }
 0x2e0   :  { %2356 = vmatpush3.msra.mxu1 %v2723_v2  ;;  %2363 = vmatprep.mubr.msk.f32.mxu1 %vm2658_vm0, %v2657_v0 }
 0x2e1   :  { %2357 = vmatprep.subr.mxu1 %v2657_v0 }
 0x2e2   :  { %2358 = vmatpush3.msra.mxu1 %v2735_v5 }
 0x2e3   :  { %2359 = vmatprep.subr.mxu1 %v2657_v0 }
 0x2e4   :  { %2360 = vmatpush3.msra.mxu1 %v2743_v6 }
 0x2e5   :  { %2361 = vmatprep.subr.mxu1 %v2657_v0 }
 0x2e6   :  { %2362 = vmatpush3.msra.mxu1 %v2751_v7 }
 0x2e7   :  { %2377 = vmatprep.subr.mxu1 %v2657_v0 }
 0x39f   :  { %v386_v35 = vpop.f32.mrf.mxu1 }
 0x3a0   :  { %v390_v36 = vadd.f32 %v386_v35, %v168_v34 }
 0x3a1   :  { %v2343_v37 = vpop.f32.mrf.mxu1 }
 0x3a2   :  { %v2148_v38 = vmul.f32 -1.442695, %v390_v36 }
 0x3a4   :  { %2542 = vpow2.f32 %v2148_v38 }
 0x3b1   :  { %v2543_v39 = vpop.eup %2542 }
 0x3b2   :  { %v394_v40 = vadd.f32 1.0, %v2543_v39 }
 0x3b4   :  { %2544 = vrcp.f32 %v394_v40 }
 0x3c1   :  { %v2545_v41 = vpop.eup %2544 }
 0x3c2   :  { %v397_v42 = vmul.f32 2.0, %v2545_v41 }
 0x3c4   :  { %v2149_v43 = vadd.f32 -1.0, %v397_v42 }
 0x3c6   :  { %v399_v44 = vsel %vm2782_vm4, %v2149_v43, %v2545_v41 }
 0x3c7   :  { %402 = vrot.lane.b32.xlu0 %v399_v44, %s2659_s3  ;;  %v400_v47 = vmul.f32 %v399_v44, %v304_v29  ;;  %v178_v29 = vadd.f32 %v2315_v60, %v2779_v9 }
 0x439   :  { %v403_v45 = vpop.permute.xlu0 %402 }
 0x43a   :  { %v405_v46 = vmul.f32 %v403_v45, %v399_v44 }
 0x43c   :  { %407 = vrot.lane.b32.xlu1 %v405_v46, %s2660_s29 }
 0x4ae   :  { %v408_v48 = vpop.permute.xlu1 %407 }
 0x4af   :  { %v410_v49 = vadd.f32 %v408_v48, %v400_v47 }
 0x4b1   :  { %2546 = vtanh.f32 %v410_v49 }
 0x4be   :  { %v2547_v56 = vpop.eup %2546 }
 0x4bf   :  { %413 = vrot.lane.b32.xlu0 %v2547_v56, %s2659_s3 }
 0x531   :  { %v414_v57 = vpop.permute.xlu0 %413 }
 0x532   :  { %v416_v58 = vmul.f32 %v414_v57, %v399_v44 }
 0x534   :  { %418 = vrot.lane.b32.xlu1 %v416_v58, %s2660_s29 }
 0x5a6   :  { %v419_v59 = vpop.permute.xlu1 %418 }
 0x5a7   :  { %422 = vst.msk [vmem:[#allocation3 + $0x8] sm:$0xff] %vm210_vm5, %v419_v59  ;;  %2353 = vmatmul.mubr.msk.f32.vlgmr.msra.gmra.mxu0 %vm210_vm5, %v419_v59 }
 0x5a8   :  { %2367 = vmatpush3.msra.mxu0 %v2723_v2  ;;  %2374 = vmatprep.mubr.msk.f32.mxu0 %vm2658_vm0, %v2657_v0 }
 0x5a9   :  { %2368 = vmatprep.subr.mxu0 %v2657_v0 }
 0x5aa   :  { %2369 = vmatpush3.msra.mxu0 %v2735_v5 }
 0x5ab   :  { %2370 = vmatprep.subr.mxu0 %v2657_v0 }
 0x5ac   :  { %2371 = vmatpush3.msra.mxu0 %v2743_v6 }
 0x5ad   :  { %2372 = vmatprep.subr.mxu0 %v2657_v0 }
 0x5ae   :  { %2373 = vmatpush3.msra.mxu0 %v2751_v7 }
 0x5af   :  { %2388 = vmatprep.subr.mxu0 %v2657_v0 }
 0x667   :  { %v493_v8 = vpop.f32.mrf.mxu0 }
 0x668   :  { %v497_v10 = vadd.f32 %v493_v8, %v173_v4 }
 0x669   :  { %v2354_v11 = vpop.f32.mrf.mxu0 }
 0x66a   :  { %v2151_v12 = vmul.f32 -1.442695, %v497_v10 }
 0x66c   :  { %2548 = vpow2.f32 %v2151_v12 }
 0x679   :  { %v2549_v13 = vpop.eup %2548 }
 0x67a   :  { %v501_v14 = vadd.f32 1.0, %v2549_v13 }
 0x67c   :  { %2550 = vrcp.f32 %v501_v14 }
 0x689   :  { %v2551_v15 = vpop.eup %2550 }
 0x68a   :  { %v504_v16 = vmul.f32 2.0, %v2551_v15 }
 0x68c   :  { %v2152_v17 = vadd.f32 -1.0, %v504_v16 }
 0x68e   :  { %v506_v18 = vsel %vm2782_vm4, %v2152_v17, %v2551_v15 }
 0x68f   :  { %509 = vrot.lane.b32.xlu0 %v506_v18, %s2659_s3  ;;  %v507_v21 = vmul.f32 %v506_v18, %v410_v49  ;;  %v183_v49 = vadd.f32 %v2779_v9, %v2851_v63 }
 0x701   :  { %v510_v19 = vpop.permute.xlu0 %509 }
 0x702   :  { %v512_v20 = vmul.f32 %v510_v19, %v506_v18 }
 0x704   :  { %514 = vrot.lane.b32.xlu1 %v512_v20, %s2660_s29 }
 0x776   :  { %v515_v23 = vpop.permute.xlu1 %514 }
 0x777   :  { %v517_v24 = vadd.f32 %v515_v23, %v507_v21 }
 0x779   :  { %2552 = vtanh.f32 %v517_v24 }
 0x786   :  { %v2553_v25 = vpop.eup %2552 }
 0x787   :  { %520 = vrot.lane.b32.xlu0 %v2553_v25, %s2659_s3 }
 0x7f9   :  { %v521_v26 = vpop.permute.xlu0 %520 }
 0x7fa   :  { %v523_v27 = vmul.f32 %v521_v26, %v506_v18  ;;  %v1068_v26 = vld [vmem:[%s3167_s4 + $0x18] sm:$0xff] }
 0x7fc   :  { %525 = vrot.lane.b32.xlu1 %v523_v27, %s2660_s29 }
 0x86e   :  { %v526_v28 = vpop.permute.xlu1 %525 }
 0x86f   :  { %529 = vst.msk [vmem:[#allocation3 + $0x10] sm:$0xff] %vm210_vm5, %v526_v28  ;;  %2364 = vmatmul.mubr.msk.f32.vlgmr.msra.gmra.mxu1 %vm210_vm5, %v526_v28 }
 0x870   :  { %2378 = vmatpush3.msra.mxu1 %v2723_v2  ;;  %2385 = vmatprep.mubr.msk.f32.mxu1 %vm2658_vm0, %v2657_v0 }
 0x871   :  { %2379 = vmatprep.subr.mxu1 %v2657_v0 }
 0x872   :  { %2380 = vmatpush3.msra.mxu1 %v2735_v5 }
 0x873   :  { %2381 = vmatprep.subr.mxu1 %v2657_v0 }
 0x874   :  { %2382 = vmatpush3.msra.mxu1 %v2743_v6 }
 0x875   :  { %2383 = vmatprep.subr.mxu1 %v2657_v0 }
 0x876   :  { %2384 = vmatpush3.msra.mxu1 %v2751_v7 }
 0x877   :  { %2399 = vmatprep.subr.mxu1 %v2657_v0 }
 0x92f   :  { %v600_v30 = vpop.f32.mrf.mxu1 }
 0x930   :  { %v604_v31 = vadd.f32 %v600_v30, %v178_v29 }
 0x931   :  { %v2365_v32 = vpop.f32.mrf.mxu1 }
 0x932   :  { %v2154_v33 = vmul.f32 -1.442695, %v604_v31  ;;  %v1067_v31 = vld [vmem:[%s3167_s4 + $0x10] sm:$0xff]  ;;  %v1074_v32 = vld [vmem:[#allocation3] sm:$0xff] }
 0x934   :  { %2554 = vpow2.f32 %v2154_v33  ;;  %v1066_v33 = vld [vmem:[%s3167_s4 + $0x8] sm:$0xff] }
 0x941   :  { %v2555_v34 = vpop.eup %2554 }
 0x942   :  { %v608_v35 = vadd.f32 1.0, %v2555_v34  ;;  %v1065_v34 = vld [vmem:[%s3167_s4] sm:$0xff] }
 0x944   :  { %2556 = vrcp.f32 %v608_v35  ;;  %v1075_v35 = vld [vmem:[#allocation3 + $0x8] sm:$0xff] }
 0x951   :  { %v2557_v36 = vpop.eup %2556 }
 0x952   :  { %v611_v37 = vmul.f32 2.0, %v2557_v36 }
 0x954   :  { %v2155_v38 = vadd.f32 -1.0, %v611_v37 }
 0x956   :  { %v613_v39 = vsel %vm2782_vm4, %v2155_v38, %v2557_v36  ;;  %v1076_v36 = vld [vmem:[#allocation3 + $0x10] sm:$0xff] }
 0x957   :  { %616 = vrot.lane.b32.xlu0 %v613_v39, %s2659_s3  ;;  %v614_v42 = vmul.f32 %v613_v39, %v517_v24 }
 0x9c9   :  { %v617_v40 = vpop.permute.xlu0 %616 }
 0x9ca   :  { %v619_v41 = vmul.f32 %v617_v40, %v613_v39  ;;  %v193_v40 = vadd.f32 %v2779_v9, %v2855_v3 }
 0x9cc   :  { %621 = vrot.lane.b32.xlu1 %v619_v41, %s2660_s29 }
 0xa3e   :  { %v622_v43 = vpop.permute.xlu1 %621 }
 0xa3f   :  { %v624_v44 = vadd.f32 %v622_v43, %v614_v42 }
 0xa41   :  { %2558 = vtanh.f32 %v624_v44 }
 0xa4e   :  { %v2559_v45 = vpop.eup %2558 }
 0xa4f   :  { %627 = vrot.lane.b32.xlu0 %v2559_v45, %s2659_s3 }
 0xac1   :  { %v628_v46 = vpop.permute.xlu0 %627 }
 0xac2   :  { %v630_v47 = vmul.f32 %v628_v46, %v613_v39 }
 0xac4   :  { %632 = vrot.lane.b32.xlu1 %v630_v47, %s2660_s29 }
 0xb36   :  { %v633_v48 = vpop.permute.xlu1 %632 }
 0xb37   :  { %636 = vst.msk [vmem:[#allocation3 + $0x18] sm:$0xff] %vm210_vm5, %v633_v48  ;;  %2375 = vmatmul.mubr.msk.f32.vlgmr.msra.gmra.mxu0 %vm210_vm5, %v633_v48 }
 0xb38   :  { %2389 = vmatpush3.msra.mxu0 %v2723_v2  ;;  %2396 = vmatprep.mubr.msk.f32.mxu0 %vm2658_vm0, %v2657_v0 }
 0xb39   :  { %2390 = vmatprep.subr.mxu0 %v2657_v0 }
 0xb3a   :  { %2391 = vmatpush3.msra.mxu0 %v2735_v5 }
 0xb3b   :  { %2392 = vmatprep.subr.mxu0 %v2657_v0 }
 0xb3c   :  { %2393 = vmatpush3.msra.mxu0 %v2743_v6 }
 0xb3d   :  { %2394 = vmatprep.subr.mxu0 %v2657_v0 }
 0xb3e   :  { %2395 = vmatpush3.msra.mxu0 %v2751_v7  ;;  %v1077_v37 = vld [vmem:[#allocation3 + $0x18] sm:$0xff] }
 0xb3f   :  { %2410 = vmatprep.subr.mxu0 %v1068_v26 }
 0xbf7   :  { %v707_v50 = vpop.f32.mrf.mxu0 }
 0xbf8   :  { %v711_v51 = vadd.f32 %v707_v50, %v183_v49 }
 0xbf9   :  { %v2376_v52 = vpop.f32.mrf.mxu0 }
 0xbfa   :  { %v2157_v53 = vmul.f32 -1.442695, %v711_v51 }
 0xbfc   :  { %2560 = vpow2.f32 %v2157_v53 }
 0xc09   :  { %v2561_v54 = vpop.eup %2560 }
 0xc0a   :  { %v715_v55 = vadd.f32 1.0, %v2561_v54 }
 0xc0c   :  { %2562 = vrcp.f32 %v715_v55 }
 0xc19   :  { %v2563_v56 = vpop.eup %2562 }
 0xc1a   :  { %v718_v57 = vmul.f32 2.0, %v2563_v56 }
 0xc1c   :  { %v2158_v58 = vadd.f32 -1.0, %v718_v57  ;;  %v2962_v57 = vld [vmem:[%s3168_s5 + $0x10] sm:$0xff] }
 0xc1e   :  { %v720_v59 = vsel %vm2782_vm4, %v2158_v58, %v2563_v56  ;;  %v2956_v56 = vld [vmem:[%s3168_s5 + $0x18] sm:$0xff]  ;;  %v2969_v58 = vld [vmem:[%s3168_s5 + $0x8] sm:$0xff] }
 0xc1f   :  { %723 = vrot.lane.b32.xlu0 %v720_v59, %s2659_s3  ;;  %v721_v63 = vmul.f32 %v720_v59, %v624_v44 }
 0xc91   :  { %v724_v60 = vpop.permute.xlu0 %723 }
 0xc92   :  { %v726_v61 = vmul.f32 %v724_v60, %v720_v59 }
 0xc94   :  { %728 = vrot.lane.b32.xlu1 %v726_v61, %s2660_s29 }
 0xd06   :  { %v729_v4 = vpop.permute.xlu1 %728 }
 0xd07   :  { %v731_v8 = vadd.f32 %v729_v4, %v721_v63 }
 0xd09   :  { %2564 = vtanh.f32 %v731_v8 }
 0xd16   :  { %v2565_v10 = vpop.eup %2564 }
 0xd17   :  { %734 = vrot.lane.b32.xlu0 %v2565_v10, %s2659_s3 }
 0xd89   :  { %v735_v11 = vpop.permute.xlu0 %734 }
 0xd8a   :  { %v737_v12 = vmul.f32 %v735_v11, %v720_v59  ;;  %v2976_v59 = vld [vmem:[%s3168_s5] sm:$0xff] }
 0xd8c   :  { %739 = vrot.lane.b32.xlu1 %v737_v12, %s2660_s29 }
 0xdfe   :  { %v740_v13 = vpop.permute.xlu1 %739 }
 0xdff   :  { %743 = vst.msk [vmem:[#allocation3 + $0x20] sm:$0xff] %vm210_vm5, %v740_v13  ;;  %2386 = vmatmul.mubr.msk.f32.vlgmr.msra.gmra.mxu1 %vm210_vm5, %v740_v13 }
 0xe00   :  { %2400 = vmatpush3.msra.mxu1 %v2723_v2  ;;  %2407 = vmatprep.mubr.msk.f32.mxu1 %vm2658_vm0, %v2657_v0  ;;  %v188_v2 = vadd.f32 %v2849_v62, %v2779_v9 }
 0xe01   :  { %2401 = vmatprep.subr.mxu1 %v2657_v0 }
 0xe02   :  { %2402 = vmatpush3.msra.mxu1 %v2735_v5 }
 0xe03   :  { %2403 = vmatprep.subr.mxu1 %v2657_v0 }
 0xe04   :  { %2404 = vmatpush3.msra.mxu1 %v2743_v6 }
 0xe05   :  { %2405 = vmatprep.subr.mxu1 %v2657_v0 }
 0xe06   :  { %2406 = vmatpush3.msra.mxu1 %v2751_v7  ;;  %v1078_v38 = vld [vmem:[#allocation3 + $0x20] sm:$0xff] }
 0xe07   :  { %2430 = vmatprep.subr.mxu1 %v2657_v0 }
 0xebf   :  { %v814_v14 = vpop.f32.mrf.mxu1 }
 0xec0   :  { %v818_v15 = vadd.f32 %v814_v14, %v188_v2  ;;  %v3013_v14 = vld [vmem:[%s3169_s6] ss:$0 sm:$0xff] }
 0xec1   :  { %v2387_v16 = vpop.f32.mrf.mxu1 }
 0xec2   :  { %v2160_v17 = vmul.f32 -1.442695, %v818_v15 }
 0xec4   :  { %2566 = vpow2.f32 %v2160_v17 }
 0xed1   :  { %v2567_v18 = vpop.eup %2566 }
 0xed2   :  { %v822_v5 = vadd.f32 1.0, %v2567_v18 }
 0xed4   :  { %2568 = vrcp.f32 %v822_v5 }
 0xee1   :  { %v2569_v19 = vpop.eup %2568 }
 0xee2   :  { %v825_v20 = vmul.f32 2.0, %v2569_v19 }
 0xee4   :  { %v2161_v6 = vadd.f32 -1.0, %v825_v20 }
 0xee6   :  { %v827_v21 = vsel %vm2782_vm4, %v2161_v6, %v2569_v19 }
 0xee7   :  { %830 = vrot.lane.b32.xlu0 %v827_v21, %s2659_s3  ;;  %v828_v62 = vmul.f32 %v827_v21, %v731_v8  ;;  %v198_v8 = vadd.f32 %v2853_v1, %v2779_v9 }
 0xf59   :  { %v831_v7 = vpop.permute.xlu0 %830 }
 0xf5a   :  { %v833_v23 = vmul.f32 %v831_v7, %v827_v21 }
 0xf5c   :  { %835 = vrot.lane.b32.xlu1 %v833_v23, %s2660_s29 }
 0xfce   :  { %v836_v24 = vpop.permute.xlu1 %835 }
 0xfcf   :  { %v838_v25 = vadd.f32 %v836_v24, %v828_v62 }
 0xfd1   :  { %2570 = vtanh.f32 %v838_v25 }
 0xfde   :  { %v2571_v27 = vpop.eup %2570 }
 0xfdf   :  { %841 = vrot.lane.b32.xlu0 %v2571_v27, %s2659_s3 }
0x1051   :  { %v842_v28 = vpop.permute.xlu0 %841 }
0x1052   :  { %v844_v29 = vmul.f32 %v842_v28, %v827_v21 }
0x1054   :  { %846 = vrot.lane.b32.xlu1 %v844_v29, %s2660_s29 }
0x10c6   :  { %v847_v30 = vpop.permute.xlu1 %846 }
0x10c7   :  { %850 = vst.msk [vmem:[#allocation3 + $0x28] sm:$0xff] %vm210_vm5, %v847_v30  ;;  %2397 = vmatmul.mubr.msk.f32.vlgmr.msra.gmra.mxu0 %vm210_vm5, %v847_v30 }
0x10c8   :  { %2411 = vmatpush3.msra.mxu0 %v1068_v26  ;;  %2418 = vmatprep.mubr.msk.f32.mxu0 %vm210_vm5, %v1074_v32 }
0x10c9   :  { %2412 = vmatprep.subr.mxu0 %v1067_v31 }
0x10ca   :  { %2413 = vmatpush3.msra.mxu0 %v1067_v31 }
0x10cb   :  { %2414 = vmatprep.subr.mxu0 %v1066_v33 }
0x10cc   :  { %2415 = vmatpush3.msra.mxu0 %v1066_v33 }
0x10cd   :  { %2416 = vmatprep.subr.mxu0 %v1065_v34 }
0x10ce   :  { %2417 = vmatpush3.msra.mxu0 %v1065_v34  ;;  %v1079_v39 = vld [vmem:[#allocation3 + $0x28] sm:$0xff] }
0x10cf   :  { %2419 = vmatmul.mubr.msk.f32.vlgmr.msra.gmra.mxu0 %vm210_vm5, %v1075_v35  ;;  %2452 = vmatprep.subr.mxu0 %v2657_v0 }
0x10d0   :  { %2421 = vmatprep.mubr.msk.f32.mxu0 %vm210_vm5, %v1076_v36  ;;  %2453 = vmatpush3.msra.mxu0 %v2956_v56 }
0x10d1   :  { %2454 = vmatprep.subr.mxu0 %v2657_v0 }
0x10d2   :  { %2455 = vmatpush3.msra.mxu0 %v2962_v57 }
0x10d3   :  { %2422 = vmatmul.mubr.msk.f32.gmra.mxu0 %vm210_vm5, %v1077_v37  ;;  %2456 = vmatprep.subr.mxu0 %v2657_v0 }
0x10d4   :  { %2424 = vmatprep.mubr.msk.f32.mxu0 %vm210_vm5, %v1078_v38  ;;  %2457 = vmatpush3.msra.mxu0 %v2969_v58 }
0x10d5   :  { %2458 = vmatprep.subr.mxu0 %v2657_v0 }
0x10d6   :  { %2459 = vmatpush3.msra.mxu0 %v2976_v59 }
0x10d7   :  { %2425 = vmatmul.mubr.msk.f32.gmra.mxu0 %vm210_vm5, %v1079_v39  ;;  %2474 = vmatprep.subr.mxu0 %v2657_v0 }
0x1187   :  { %v921_v41 = vpop.f32.mrf.mxu0 }
0x1188   :  { %v925_v42 = vadd.f32 %v921_v41, %v193_v40 }
0x1189   :  { %v2398_v43 = vpop.f32.mrf.mxu0 }
0x118a   :  { %v2163_v44 = vmul.f32 -1.442695, %v925_v42 }
0x118c   :  { %2572 = vpow2.f32 %v2163_v44 }
0x118f   :  { %v3008_v10 = vpop.f32.mrf.mxu0 }
0x1191   :  { %v1178_v2 = vpop.f32.mrf.mxu0 }
0x1192   :  { %v1179_v15 = vadd.f32 %v3013_v14, %v1178_v2 }
0x1199   :  { %v2573_v45 = vpop.eup %2572 }
0x119a   :  { %v929_v46 = vadd.f32 1.0, %v2573_v45  ;;  %v1184_v45 = vadd.f32 %v3008_v10, %v3013_v14 }
0x119c   :  { %2574 = vrcp.f32 %v929_v46 }
0x11a9   :  { %v2575_v47 = vpop.eup %2574 }
0x11aa   :  { %v932_v48 = vmul.f32 2.0, %v2575_v47 }
0x11ac   :  { %v2164_v49 = vadd.f32 -1.0, %v932_v48 }
0x11ae   :  { %v934_v50 = vsel %vm2782_vm4, %v2164_v49, %v2575_v47 }
0x11af   :  { %937 = vrot.lane.b32.xlu0 %v934_v50, %s2659_s3  ;;  %v935_v3 = vmul.f32 %v934_v50, %v838_v25 }
0x1221   :  { %v938_v51 = vpop.permute.xlu0 %937 }
0x1222   :  { %v940_v52 = vmul.f32 %v938_v51, %v934_v50 }
0x1224   :  { %942 = vrot.lane.b32.xlu1 %v940_v52, %s2660_s29 }
0x1296   :  { %v943_v53 = vpop.permute.xlu1 %942 }
0x1297   :  { %v2949_v54 = vadd.f32 %v943_v53, %v935_v3 }
0x1299   :  { %2576 = vtanh.f32 %v2949_v54 }
0x12a6   :  { %v2577_v55 = vpop.eup %2576 }
0x12a7   :  { %948 = vrot.lane.b32.xlu0 %v2577_v55, %s2659_s3 }
0x1319   :  { %v949_v60 = vpop.permute.xlu0 %948 }
0x131a   :  { %v951_v61 = vmul.f32 %v949_v60, %v934_v50 }
0x131c   :  { %953 = vrot.lane.b32.xlu1 %v951_v61, %s2660_s29 }
0x138e   :  { %v954_v63 = vpop.permute.xlu1 %953 }
0x138f   :  { %957 = vst.msk [vmem:[#allocation3 + $0x30] sm:$0xff] %vm210_vm5, %v954_v63  ;;  %2408 = vmatmul.mubr.msk.f32.vlgmr.msra.gmra.mxu1 %vm210_vm5, %v954_v63 }
0x1390   :  { %2431 = vmatpush3.msra.mxu1 %v2956_v56  ;;  %2438 = vmatprep.mubr.msk.f32.mxu1 %vm2658_vm0, %v2657_v0 }
0x1391   :  { %2432 = vmatprep.subr.mxu1 %v2657_v0 }
0x1392   :  { %2433 = vmatpush3.msra.mxu1 %v2962_v57 }
0x1393   :  { %2434 = vmatprep.subr.mxu1 %v2657_v0 }
0x1394   :  { %2435 = vmatpush3.msra.mxu1 %v2969_v58 }
0x1395   :  { %2436 = vmatprep.subr.mxu1 %v2657_v0 }
0x1396   :  { %2437 = vmatpush3.msra.mxu1 %v2976_v59  ;;  %v1080_v4 = vld [vmem:[#allocation3 + $0x30] sm:$0xff] }
0x1397   :  { %2439 = vmatmul.mubr.f32.vlgmr.msra.gmra.mxu1 %v2657_v0  ;;  %2427 = vmatprep.mubr.msk.f32.mxu0 %vm210_vm5, %v1080_v4 }
0x1398   :  { %2441 = vmatprep.subr.mxu1 %v2657_v0  ;;  %2449 = vmatprep.mubr.msk.f32.mxu1 %vm2658_vm0, %v2657_v0 }
0x1399   :  { %2442 = vmatpush3.msra.mxu1 %v2956_v56 }
0x139a   :  { %2443 = vmatprep.subr.mxu1 %v2657_v0 }
0x139b   :  { %2444 = vmatpush3.msra.mxu1 %v2962_v57 }
0x139c   :  { %2445 = vmatprep.subr.mxu1 %v2657_v0 }
0x139d   :  { %2446 = vmatpush3.msra.mxu1 %v2969_v58 }
0x139e   :  { %2447 = vmatprep.subr.mxu1 %v2657_v0 }
0x139f   :  { %2448 = vmatpush3.msra.mxu1 %v2976_v59 }
0x13a0   :  { %2463 = vmatprep.subr.mxu1 %v2657_v0 }
0x144f   :  { %v1028_v11 = vpop.f32.mrf.mxu1 }
0x1450   :  { %v1032_v12 = vadd.f32 %v1028_v11, %v198_v8 }
0x1451   :  { %v2409_v13 = vpop.f32.mrf.mxu1 }
0x1452   :  { %v2166_v62 = vmul.f32 -1.442695, %v1032_v12 }
0x1457   :  { %v1292_v16 = vpop.f32.mrf.mxu1 }
0x1458   :  { %v1296_v17 = vadd.f32 %v1292_v16, %v1179_v15  ;;  %v2423_v15 = vpop.f32.mrf.mxu0 }
0x1459   :  { %v2440_v18 = vpop.f32.mrf.mxu1 }
0x145a   :  { %v2177_v5 = vmul.f32 -1.442695, %v1296_v17  ;;  %v1188_v16 = vpop.f32.mrf.mxu0 }
0x145c   :  { %2578 = vpow2.f32 %v2177_v5  ;;  %v3063_v17 = vpop.f32.mrf.mxu0 }
0x145e   :  { %v3065_v18 = vpop.f32.mrf.mxu0 }
0x1469   :  { %v2579_v19 = vpop.eup %2578 }
0x146a   :  { %v1300_v9 = vadd.f32 1.0, %v2579_v19 }
0x146c   :  { %2580 = vrcp.f32 %v1300_v9  ;;  %v1189_v9 = vadd.f32 %v3013_v14, %v1188_v16 }
0x146d   :  { %2582 = vpow2.f32 %v2166_v62 }
0x1479   :  { %v2581_v1 = vpop.eup %2580 }
0x147a   :  { %v1303_v20 = vmul.f32 2.0, %v2581_v1  ;;  %v2583_v24 = vpop.eup %2582 }
0x147b   :  { %v1036_v25 = vadd.f32 1.0, %v2583_v24 }
0x147c   :  { %v2178_v6 = vadd.f32 -1.0, %v1303_v20 }
0x147d   :  { %2584 = vrcp.f32 %v1036_v25 }
0x147e   :  { %v1305_v21 = vsel %vm2782_vm4, %v2178_v6, %v2581_v1 }
0x147f   :  { %1308 = vrot.lane.b32.xlu0 %v1305_v21, %s2659_s3  ;;  %v1306_v26 = vmul.f32 0.0, %v1305_v21 }
0x148a   :  { %v2585_v29 = vpop.eup %2584 }
0x148b   :  { %v1039_v30 = vmul.f32 2.0, %v2585_v29 }
0x148d   :  { %v2167_v32 = vadd.f32 -1.0, %v1039_v30 }
0x148f   :  { %v1041_v33 = vsel %vm2782_vm4, %v2167_v32, %v2585_v29 }
0x1490   :  { %v1042_v39 = vmul.f32 %v1041_v33, %v2949_v54 }
0x14f1   :  { %v1309_v7 = vpop.permute.xlu0 %1308 }
0x14f2   :  { %v1311_v23 = vmul.f32 %v1309_v7, %v1305_v21 }
0x14f4   :  { %1313 = vrot.lane.b32.xlu1 %v1311_v23, %s2660_s29 }
0x1566   :  { %v1314_v27 = vpop.permute.xlu1 %1313 }
0x1567   :  { %v1316_v28 = vadd.f32 %v1314_v27, %v1306_v26 }
0x1569   :  { %2586 = vtanh.f32 %v1316_v28 }
0x1576   :  { %v2587_v31 = vpop.eup %2586 }
0x1577   :  { %1319 = vrot.lane.b32.xlu0 %v2587_v31, %s2659_s3 }
0x157b   :  { %1044 = vrot.lane.b32.xlu0 %v1041_v33, %s2659_s3 }
0x15e9   :  { %v1320_v34 = vpop.permute.xlu0 %1319 }
0x15ea   :  { %v1322_v35 = vmul.f32 %v1320_v34, %v1305_v21 }
0x15ec   :  { %1325 = vrot.lane.b32.xlu1 %v1322_v35, %s2660_s29 }
0x15ed   :  { %v1045_v36 = vpop.permute.xlu0 %1044 }
0x15ee   :  { %v1047_v37 = vmul.f32 %v1045_v36, %v1041_v33  ;;  %v1194_v36 = vadd.f32 %v2423_v15, %v3013_v14 }
0x15f0   :  { %1049 = vrot.lane.b32.xlu0 %v1047_v37, %s2660_s29 }
0x165e   :  { %v1326_v38 = vpop.permute.xlu1 %1325 }
0x165f   :  { %2450 = vmatmul.mubr.msk.f32.vlgmr.msra.gmra.mxu1 %vm210_vm5, %v1326_v38 }
0x1660   :  { %2464 = vmatpush3.msra.mxu1 %v2956_v56  ;;  %2471 = vmatprep.mubr.msk.f32.mxu1 %vm2658_vm0, %v2657_v0 }
0x1661   :  { %2465 = vmatprep.subr.mxu1 %v2657_v0 }
0x1662   :  { %v1050_v40 = vpop.permute.xlu0 %1049  ;;  %2466 = vmatpush3.msra.mxu1 %v2962_v57 }
0x1663   :  { %v1052_v41 = vadd.f32 %v1050_v40, %v1042_v39  ;;  %2467 = vmatprep.subr.mxu1 %v2657_v0 }
0x1664   :  { %2468 = vmatpush3.msra.mxu1 %v2969_v58 }
0x1665   :  { %2588 = vtanh.f32 %v1052_v41  ;;  %2469 = vmatprep.subr.mxu1 %v2657_v0 }
0x1666   :  { %2470 = vmatpush3.msra.mxu1 %v2976_v59 }
0x1667   :  { %2485 = vmatprep.subr.mxu1 %v2657_v0 }
0x1672   :  { %v2589_v42 = vpop.eup %2588 }
0x1673   :  { %1055 = vrot.lane.b32.xlu0 %v2589_v42, %s2659_s3 }
0x16e5   :  { %v1056_v43 = vpop.permute.xlu0 %1055 }
0x16e6   :  { %v1058_v44 = vmul.f32 %v1056_v43, %v1041_v33 }
0x16e8   :  { %1060 = vrot.lane.b32.xlu0 %v1058_v44, %s2660_s29 }
0x171f   :  { %v1395_v46 = vpop.f32.mrf.mxu1 }
0x1720   :  { %v1399_v47 = vadd.f32 %v1395_v46, %v1184_v45 }
0x1721   :  { %v2451_v48 = vpop.f32.mrf.mxu1 }
0x1722   :  { %v2180_v49 = vmul.f32 -1.442695, %v1399_v47 }
0x1724   :  { %2590 = vpow2.f32 %v2180_v49 }
0x1731   :  { %v2591_v50 = vpop.eup %2590 }
0x1732   :  { %v1403_v51 = vadd.f32 1.0, %v2591_v50 }
0x1734   :  { %2592 = vrcp.f32 %v1403_v51 }
0x1741   :  { %v2593_v52 = vpop.eup %2592 }
0x1742   :  { %v1406_v3 = vmul.f32 2.0, %v2593_v52 }
0x1744   :  { %v2181_v53 = vadd.f32 -1.0, %v1406_v3 }
0x1746   :  { %v1408_v54 = vsel %vm2782_vm4, %v2181_v53, %v2593_v52 }
0x1747   :  { %1411 = vrot.lane.b32.xlu1 %v1408_v54, %s2659_s3  ;;  %v1409_v4 = vmul.f32 %v1408_v54, %v1316_v28 }
0x175a   :  { %v1061_v55 = vpop.permute.xlu0 %1060 }
0x175b   :  { %1064 = vst.msk [vmem:[#allocation3 + $0x38] sm:$0xff] %vm210_vm5, %v1061_v55  ;;  %v1199_v55 = vadd.f32 %v3013_v14, %v3065_v18 }
0x1762   :  { %v1081_v60 = vld [vmem:[#allocation3 + $0x38] sm:$0xff] }
0x1763   :  { %2428 = vmatmul.mubr.msk.f32.gmra.mxu0 %vm210_vm5, %v1081_v60 }
0x1764   :  { %2460 = vmatprep.mubr.msk.f32.mxu0 %vm2658_vm0, %v2657_v0 }
0x17b9   :  { %v1412_v61 = vpop.permute.xlu1 %1411 }
0x17ba   :  { %v1414_v63 = vmul.f32 %v1412_v61, %v1408_v54 }
0x17bc   :  { %1416 = vrot.lane.b32.xlu1 %v1414_v63, %s2660_s29 }
0x1823   :  { %v3067_v5 = vpop.f32.mrf.mxu0 }
0x1825   :  { %v3069_v19 = vpop.f32.mrf.mxu0 }
0x182e   :  { %v1417_v8 = vpop.permute.xlu1 %1416 }
0x182f   :  { %v1419_v10 = vadd.f32 %v1417_v8, %v1409_v4 }
0x1831   :  { %2594 = vtanh.f32 %v1419_v10 }
0x183e   :  { %v2595_v11 = vpop.eup %2594 }
0x183f   :  { %1422 = vrot.lane.b32.xlu1 %v2595_v11, %s2659_s3 }
0x18b1   :  { %v1423_v12 = vpop.permute.xlu1 %1422 }
0x18b2   :  { %v1425_v13 = vmul.f32 %v1423_v12, %v1408_v54 }
0x18b4   :  { %1428 = vrot.lane.b32.xlu1 %v1425_v13, %s2660_s29 }
0x1926   :  { %v1429_v2 = vpop.permute.xlu1 %1428 }
0x1927   :  { %2461 = vmatmul.mubr.msk.f32.vlgmr.msra.gmra.mxu0 %vm210_vm5, %v1429_v2 }
0x1928   :  { %2475 = vmatpush3.msra.mxu0 %v2956_v56  ;;  %2482 = vmatprep.mubr.msk.f32.mxu0 %vm2658_vm0, %v2657_v0 }
0x1929   :  { %2476 = vmatprep.subr.mxu0 %v2657_v0 }
0x192a   :  { %2477 = vmatpush3.msra.mxu0 %v2962_v57 }
0x192b   :  { %2478 = vmatprep.subr.mxu0 %v2657_v0 }
0x192c   :  { %2479 = vmatpush3.msra.mxu0 %v2969_v58 }
0x192d   :  { %2480 = vmatprep.subr.mxu0 %v2657_v0 }
0x192e   :  { %2481 = vmatpush3.msra.mxu0 %v2976_v59 }
0x192f   :  { %2496 = vmatprep.subr.mxu0 %v2657_v0 }
0x19e7   :  { %v1498_v1 = vpop.f32.mrf.mxu0 }
0x19e8   :  { %v1502_v20 = vadd.f32 %v1498_v1, %v1189_v9 }
0x19e9   :  { %v2462_v6 = vpop.f32.mrf.mxu0 }
0x19ea   :  { %v2183_v21 = vmul.f32 -1.442695, %v1502_v20 }
0x19ec   :  { %2596 = vpow2.f32 %v2183_v21 }
0x19f9   :  { %v2597_v7 = vpop.eup %2596 }
0x19fa   :  { %v1506_v23 = vadd.f32 1.0, %v2597_v7 }
0x19fc   :  { %2598 = vrcp.f32 %v1506_v23  ;;  %v1204_v23 = vadd.f32 %v3063_v17, %v3013_v14 }
0x1a09   :  { %v2599_v62 = vpop.eup %2598 }
0x1a0a   :  { %v1509_v24 = vmul.f32 2.0, %v2599_v62 }
0x1a0c   :  { %v2184_v25 = vadd.f32 -1.0, %v1509_v24 }
0x1a0e   :  { %v1511_v26 = vsel %vm2782_vm4, %v2184_v25, %v2599_v62 }
0x1a0f   :  { %1514 = vrot.lane.b32.xlu0 %v1511_v26, %s2659_s3  ;;  %v1512_v29 = vmul.f32 %v1511_v26, %v1419_v10 }
0x1a81   :  { %v1515_v27 = vpop.permute.xlu0 %1514 }
0x1a82   :  { %v1517_v28 = vmul.f32 %v1515_v27, %v1511_v26 }
0x1a84   :  { %1519 = vrot.lane.b32.xlu1 %v1517_v28, %s2660_s29 }
0x1af6   :  { %v1520_v30 = vpop.permute.xlu1 %1519 }
0x1af7   :  { %v1522_v31 = vadd.f32 %v1520_v30, %v1512_v29 }
0x1af9   :  { %2600 = vtanh.f32 %v1522_v31 }
0x1b06   :  { %v2601_v32 = vpop.eup %2600 }
0x1b07   :  { %1525 = vrot.lane.b32.xlu0 %v2601_v32, %s2659_s3 }
0x1b79   :  { %v1526_v33 = vpop.permute.xlu0 %1525 }
0x1b7a   :  { %v1528_v34 = vmul.f32 %v1526_v33, %v1511_v26 }
0x1b7c   :  { %1531 = vrot.lane.b32.xlu1 %v1528_v34, %s2660_s29 }
0x1bee   :  { %v1532_v35 = vpop.permute.xlu1 %1531 }
0x1bef   :  { %2472 = vmatmul.mubr.msk.f32.vlgmr.msra.gmra.mxu1 %vm210_vm5, %v1532_v35 }
0x1bf0   :  { %2486 = vmatpush3.msra.mxu1 %v2956_v56  ;;  %2493 = vmatprep.mubr.msk.f32.mxu1 %vm2658_vm0, %v2657_v0 }
0x1bf1   :  { %2487 = vmatprep.subr.mxu1 %v2657_v0 }
0x1bf2   :  { %2488 = vmatpush3.msra.mxu1 %v2962_v57 }
0x1bf3   :  { %2489 = vmatprep.subr.mxu1 %v2657_v0 }
0x1bf4   :  { %2490 = vmatpush3.msra.mxu1 %v2969_v58 }
0x1bf5   :  { %2491 = vmatprep.subr.mxu1 %v2657_v0 }
0x1bf6   :  { %2492 = vmatpush3.msra.mxu1 %v2976_v59 }
0x1bf7   :  { %2507 = vmatprep.subr.mxu1 %v2657_v0 }
0x1caf   :  { %v1601_v37 = vpop.f32.mrf.mxu1 }
0x1cb0   :  { %v1605_v38 = vadd.f32 %v1601_v37, %v1194_v36  ;;  %v1209_v37 = vadd.f32 %v3013_v14, %v3069_v19 }
0x1cb1   :  { %v2473_v39 = vpop.f32.mrf.mxu1 }
0x1cb2   :  { %v2186_v40 = vmul.f32 -1.442695, %v1605_v38 }
0x1cb4   :  { %2602 = vpow2.f32 %v2186_v40 }
0x1cc1   :  { %v2603_v41 = vpop.eup %2602 }
0x1cc2   :  { %v1609_v42 = vadd.f32 1.0, %v2603_v41 }
0x1cc4   :  { %2604 = vrcp.f32 %v1609_v42 }
0x1cd1   :  { %v2605_v43 = vpop.eup %2604 }
0x1cd2   :  { %v1612_v44 = vmul.f32 2.0, %v2605_v43 }
0x1cd4   :  { %v2187_v45 = vadd.f32 -1.0, %v1612_v44 }
0x1cd6   :  { %v1614_v46 = vsel %vm2782_vm4, %v2187_v45, %v2605_v43 }
0x1cd7   :  { %1617 = vrot.lane.b32.xlu0 %v1614_v46, %s2659_s3  ;;  %v1615_v49 = vmul.f32 %v1614_v46, %v1522_v31 }
0x1d49   :  { %v1618_v47 = vpop.permute.xlu0 %1617 }
0x1d4a   :  { %v1620_v48 = vmul.f32 %v1618_v47, %v1614_v46 }
0x1d4c   :  { %1622 = vrot.lane.b32.xlu1 %v1620_v48, %s2660_s29 }
0x1dbe   :  { %v1623_v50 = vpop.permute.xlu1 %1622 }
0x1dbf   :  { %v1625_v51 = vadd.f32 %v1623_v50, %v1615_v49 }
0x1dc1   :  { %2606 = vtanh.f32 %v1625_v51 }
0x1dce   :  { %v2607_v52 = vpop.eup %2606 }
0x1dcf   :  { %1628 = vrot.lane.b32.xlu0 %v2607_v52, %s2659_s3 }
0x1e41   :  { %v1629_v3 = vpop.permute.xlu0 %1628 }
0x1e42   :  { %v1631_v53 = vmul.f32 %v1629_v3, %v1614_v46 }
0x1e44   :  { %1634 = vrot.lane.b32.xlu1 %v1631_v53, %s2660_s29 }
0x1eb6   :  { %v1635_v54 = vpop.permute.xlu1 %1634 }
0x1eb7   :  { %2483 = vmatmul.mubr.msk.f32.vlgmr.msra.gmra.mxu0 %vm210_vm5, %v1635_v54 }
0x1eb8   :  { %2497 = vmatpush3.msra.mxu0 %v2956_v56  ;;  %2504 = vmatprep.mubr.msk.f32.mxu0 %vm2658_vm0, %v2657_v0 }
0x1eb9   :  { %2498 = vmatprep.subr.mxu0 %v2657_v0 }
0x1eba   :  { %2499 = vmatpush3.msra.mxu0 %v2962_v57 }
0x1ebb   :  { %2500 = vmatprep.subr.mxu0 %v2657_v0 }
0x1ebc   :  { %2501 = vmatpush3.msra.mxu0 %v2969_v58 }
0x1ebd   :  { %2502 = vmatprep.subr.mxu0 %v2657_v0 }
0x1ebe   :  { %2503 = vmatpush3.msra.mxu0 %v2976_v59 }
0x1ebf   :  { %2518 = vmatprep.subr.mxu0 %v2657_v0 }
0x1f77   :  { %v1704_v60 = vpop.f32.mrf.mxu0 }
0x1f78   :  { %v1708_v61 = vadd.f32 %v1704_v60, %v1199_v55  ;;  %v1214_v55 = vadd.f32 %v3067_v5, %v3013_v14 }
0x1f79   :  { %v2484_v63 = vpop.f32.mrf.mxu0 }
0x1f7a   :  { %v2189_v4 = vmul.f32 -1.442695, %v1708_v61 }
0x1f7c   :  { %2608 = vpow2.f32 %v2189_v4 }
0x1f89   :  { %v2609_v8 = vpop.eup %2608 }
0x1f8a   :  { %v1712_v10 = vadd.f32 1.0, %v2609_v8 }
0x1f8c   :  { %2610 = vrcp.f32 %v1712_v10 }
0x1f99   :  { %v2611_v11 = vpop.eup %2610 }
0x1f9a   :  { %v1715_v12 = vmul.f32 2.0, %v2611_v11 }
0x1f9c   :  { %v2190_v13 = vadd.f32 -1.0, %v1715_v12 }
0x1f9e   :  { %v1717_v2 = vsel %vm2782_vm4, %v2190_v13, %v2611_v11 }
0x1f9f   :  { %1720 = vrot.lane.b32.xlu0 %v1717_v2, %s2659_s3  ;;  %v1718_v18 = vmul.f32 %v1717_v2, %v1625_v51 }
0x2011   :  { %v1721_v15 = vpop.permute.xlu0 %1720 }
0x2012   :  { %v1723_v16 = vmul.f32 %v1721_v15, %v1717_v2 }
0x2014   :  { %1725 = vrot.lane.b32.xlu1 %v1723_v16, %s2660_s29 }
0x2086   :  { %v1726_v9 = vpop.permute.xlu1 %1725 }
0x2087   :  { %v1728_v1 = vadd.f32 %v1726_v9, %v1718_v18  ;;  %v2047_v9 = vld [vmem:[#allocation4 + $0x18] sm:$0xff] }
0x2089   :  { %2612 = vtanh.f32 %v1728_v1 }
0x2096   :  { %v2613_v20 = vpop.eup %2612 }
0x2097   :  { %1731 = vrot.lane.b32.xlu0 %v2613_v20, %s2659_s3  ;;  %v2045_v20 = vld [vmem:[#allocation4 + $0x8] sm:$0xff] }
0x2109   :  { %v1732_v6 = vpop.permute.xlu0 %1731 }
0x210a   :  { %v1734_v21 = vmul.f32 %v1732_v6, %v1717_v2 }
0x210c   :  { %1737 = vrot.lane.b32.xlu1 %v1734_v21, %s2660_s29 }
0x217e   :  { %v1738_v7 = vpop.permute.xlu1 %1737 }
0x217f   :  { %2494 = vmatmul.mubr.msk.f32.vlgmr.msra.gmra.mxu1 %vm210_vm5, %v1738_v7 }
0x2180   :  { %2508 = vmatpush3.msra.mxu1 %v2956_v56  ;;  %2515 = vmatprep.mubr.msk.f32.mxu1 %vm2658_vm0, %v2657_v0 }
0x2181   :  { %2509 = vmatprep.subr.mxu1 %v2657_v0 }
0x2182   :  { %2510 = vmatpush3.msra.mxu1 %v2962_v57 }
0x2183   :  { %2511 = vmatprep.subr.mxu1 %v2657_v0 }
0x2184   :  { %2512 = vmatpush3.msra.mxu1 %v2969_v58 }
0x2185   :  { %2513 = vmatprep.subr.mxu1 %v2657_v0 }
0x2186   :  { %2514 = vmatpush3.msra.mxu1 %v2976_v59 }
0x223f   :  { %v1807_v62 = vpop.f32.mrf.mxu1 }
0x2240   :  { %v1811_v56 = vadd.f32 %v1807_v62, %v1204_v23  ;;  %v2200_v62 = vld [vmem:[%s3171_s8] ss:$0 sm:$0xff] }
0x2241   :  { %v2495_v24 = vpop.f32.mrf.mxu1 }
0x2242   :  { %v2192_v25 = vmul.f32 -1.442695, %v1811_v56 }
0x2244   :  { %2614 = vpow2.f32 %v2192_v25 }
0x2251   :  { %v2615_v26 = vpop.eup %2614 }
0x2252   :  { %v1815_v27 = vadd.f32 1.0, %v2615_v26 }
0x2254   :  { %2616 = vrcp.f32 %v1815_v27 }
0x2261   :  { %v2617_v57 = vpop.eup %2616 }
0x2262   :  { %v1818_v28 = vmul.f32 2.0, %v2617_v57 }
0x2264   :  { %v2193_v29 = vadd.f32 -1.0, %v1818_v28 }
0x2266   :  { %v1820_v58 = vsel %vm2782_vm4, %v2193_v29, %v2617_v57 }
0x2267   :  { %1823 = vrot.lane.b32.xlu0 %v1820_v58, %s2659_s3  ;;  %v1821_v17 = vmul.f32 %v1820_v58, %v1728_v1  ;;  %v2046_v1 = vld [vmem:[#allocation4 + $0x10] sm:$0xff] }
0x22d9   :  { %v1824_v59 = vpop.permute.xlu0 %1823 }
0x22da   :  { %v1826_v30 = vmul.f32 %v1824_v59, %v1820_v58 }
0x22dc   :  { %1828 = vrot.lane.b32.xlu1 %v1826_v30, %s2660_s29 }
0x234e   :  { %v1829_v31 = vpop.permute.xlu1 %1828 }
0x234f   :  { %v1831_v32 = vadd.f32 %v1829_v31, %v1821_v17 }
0x2351   :  { %2618 = vtanh.f32 %v1831_v32 }
0x235e   :  { %v2619_v33 = vpop.eup %2618 }
0x235f   :  { %1834 = vrot.lane.b32.xlu0 %v2619_v33, %s2659_s3 }
0x23d1   :  { %v1835_v34 = vpop.permute.xlu0 %1834 }
0x23d2   :  { %v1837_v35 = vmul.f32 %v1835_v34, %v1820_v58 }
0x23d4   :  { %1840 = vrot.lane.b32.xlu1 %v1837_v35, %s2660_s29 }
0x2446   :  { %v1841_v36 = vpop.permute.xlu1 %1840 }
0x2447   :  { %2505 = vmatmul.mubr.msk.f32.vlgmr.msra.gmra.mxu0 %vm210_vm5, %v1841_v36 }
0x2448   :  { %2526 = vmatprep.mubr.msk.f32.mxu0 %vm2658_vm0, %v2657_v0  ;;  %2519 = vmatpush3.msra.mxu0 %v2047_v9 }
0x2449   :  { %2520 = vmatprep.subr.mxu0 %v2657_v0 }
0x244a   :  { %2521 = vmatpush3.msra.mxu0 %v2046_v1 }
0x244b   :  { %2522 = vmatprep.subr.mxu0 %v2657_v0 }
0x244c   :  { %2523 = vmatpush3.msra.mxu0 %v2045_v20 }
0x244d   :  { %2524 = vmatprep.subr.mxu0 %v2657_v0 }
0x244e   :  { %2525 = vmatpush3.msra.mxu0 %v2044_v22 }
0x2507   :  { %v1910_v38 = vpop.f32.mrf.mxu0 }
0x2508   :  { %v1914_v39 = vadd.f32 %v1910_v38, %v1209_v37 }
0x2509   :  { %v2506_v40 = vpop.f32.mrf.mxu0 }
0x250a   :  { %v2195_v41 = vmul.f32 -1.442695, %v1914_v39 }
0x250c   :  { %2620 = vpow2.f32 %v2195_v41 }
0x2519   :  { %v2621_v42 = vpop.eup %2620 }
0x251a   :  { %v1918_v43 = vadd.f32 1.0, %v2621_v42 }
0x251c   :  { %2622 = vrcp.f32 %v1918_v43 }
0x2529   :  { %v2623_v44 = vpop.eup %2622 }
0x252a   :  { %v1921_v45 = vmul.f32 2.0, %v2623_v44 }
0x252c   :  { %v2196_v46 = vadd.f32 -1.0, %v1921_v45 }
0x252e   :  { %v1923_v47 = vsel %vm2782_vm4, %v2196_v46, %v2623_v44 }
0x252f   :  { %1926 = vrot.lane.b32.xlu0 %v1923_v47, %s2659_s3  ;;  %v1924_v19 = vmul.f32 %v1923_v47, %v1831_v32 }
0x25a1   :  { %v1927_v48 = vpop.permute.xlu0 %1926 }
0x25a2   :  { %v1929_v49 = vmul.f32 %v1927_v48, %v1923_v47 }
0x25a4   :  { %1931 = vrot.lane.b32.xlu1 %v1929_v49, %s2660_s29 }
0x2616   :  { %v1932_v50 = vpop.permute.xlu1 %1931 }
0x2617   :  { %v1934_v51 = vadd.f32 %v1932_v50, %v1924_v19 }
0x2619   :  { %2624 = vtanh.f32 %v1934_v51 }
0x2626   :  { %v2625_v52 = vpop.eup %2624 }
0x2627   :  { %1937 = vrot.lane.b32.xlu0 %v2625_v52, %s2659_s3 }
0x2699   :  { %v1938_v3 = vpop.permute.xlu0 %1937 }
0x269a   :  { %v1940_v53 = vmul.f32 %v1938_v3, %v1923_v47 }
0x269c   :  { %1943 = vrot.lane.b32.xlu1 %v1940_v53, %s2660_s29 }
0x270e   :  { %v1944_v54 = vpop.permute.xlu1 %1943 }
0x270f   :  { %2516 = vmatmul.mubr.msk.f32.vlgmr.msra.gmra.mxu1 %vm210_vm5, %v1944_v54 }
0x27cf   :  { %v2013_v60 = vpop.f32.mrf.mxu1 }
0x27d0   :  { %v2017_v61 = vadd.f32 %v2013_v60, %v1214_v55 }
0x27d1   :  { %v2517_v63 = vpop.f32.mrf.mxu1 }
0x27d2   :  { %v2198_v4 = vmul.f32 -1.442695, %v2017_v61 }
0x27d4   :  { %2626 = vpow2.f32 %v2198_v4 }
0x27e1   :  { %v2627_v8 = vpop.eup %2626 }
0x27e2   :  { %v2021_v10 = vadd.f32 1.0, %v2627_v8 }
0x27e4   :  { %2628 = vrcp.f32 %v2021_v10 }
0x27f1   :  { %v2629_v11 = vpop.eup %2628 }
0x27f2   :  { %v2024_v12 = vmul.f32 2.0, %v2629_v11 }
0x27f4   :  { %v2199_v13 = vadd.f32 -1.0, %v2024_v12 }
0x27f6   :  { %v2026_v2 = vsel %vm2782_vm4, %v2199_v13, %v2629_v11 }
0x27f7   :  { %2029 = vrot.lane.b32.xlu0 %v2026_v2, %s2659_s3  ;;  %v2027_v14 = vmul.f32 %v2026_v2, %v1934_v51 }
0x2869   :  { %v2030_v15 = vpop.permute.xlu0 %2029 }
0x286a   :  { %v2032_v16 = vmul.f32 %v2030_v15, %v2026_v2 }
0x286c   :  { %2034 = vrot.lane.b32.xlu1 %v2032_v16, %s2660_s29 }
0x28de   :  { %v2035_v5 = vpop.permute.xlu1 %2034 }
0x28df   :  { %v2037_v18 = vadd.f32 %v2035_v5, %v2027_v14 }
0x28e1   :  { %2630 = vtanh.f32 %v2037_v18 }
0x28ee   :  { %v2631_v6 = vpop.eup %2630 }
0x28ef   :  { %2040 = vrot.lane.b32.xlu0 %v2631_v6, %s2659_s3 }
0x2961   :  { %v2041_v21 = vpop.permute.xlu0 %2040 }
0x2962   :  { %v2043_v7 = vmul.f32 %v2041_v21, %v2026_v2 }
0x2964   :  { %2056 = vrot.lane.b32.xlu1 %v2043_v7, %s2660_s29 }
0x29d6   :  { %v2057_v23 = vpop.permute.xlu1 %2056 }
0x29d7   :  { %2527 = vmatmul.mubr.msk.f32.vlgmr.msra.gmra.mxu0 %vm210_vm5, %v2057_v23 }
0x2a97   :  { %v2126_v56 = vpop.f32.mrf.mxu0 }
0x2a98   :  { %v2127_v24 = vadd.f32 %v2200_v62, %v2126_v56 }
0x2a99   :  { %v2528_v25 = vpop.f32.mrf.mxu0 }
0x2a9a   :  { %2130 = vst [vmem:[%s3172_s9] sm:$0xff] %v2127_v24 }
0x2a9b   :  { %2135 = vsyncpa [#allocation5], 1 }

</bundles_post_ra>
